<compile_context>
chip_gen: v7x
topology: tpu7x:2x2x1
jax: 0.10.0
libtpu: 0.0.40
codegen_flags: <defaults>
</compile_context>

<pallas_src>
import functools

import jax
import jax.numpy as jnp
from jax import lax
from jax.experimental import pallas as pl
from jax.experimental.pallas import tpu as pltpu


def _round_up(x, m):
    return ((x + m - 1) // m) * m


def _tensorcores_per_chip():
    """Best-effort TC-per-chip detection (megacore chips: v4 / v5p / v7x)."""
    try:
        kind = jax.devices()[0].device_kind.lower()
    except Exception:  # pragma: no cover - CPU/interpret fallbacks
        return 1
    if ("v4" in kind) or ("v5p" in kind) or ("v7" in kind):
        return 2
    return 1


def _make_mlp_kernel(num_linear_layers: int, chunk: int):
    """Kernel running `num_linear_layers` Linear layers (tanh between them,
    none after the last) in the transposed, batch-on-lanes layout, looping
    over `chunk`-lane sub-slices of a large grid block."""

    def kernel(x_ref, *rest):
        out_ref = rest[-1]        # (F_out, block_n)
        param_refs = rest[:-1]    # (wT0, b0, wT1, b1, ...)

        block_n = x_ref.shape[1]
        num_chunks = block_n // chunk  # static

        # Hoist weight loads, dtype casts and bias lane-broadcasts out of the
        # chunk loop (JAX does not CSE broadcast_in_dim; weights are tiny).
        wts = []
        bbs = []
        for li in range(num_linear_layers):
            wt = param_refs[2 * li][...].astype(jnp.float32)      # (F_out, F_in)
            b = param_refs[2 * li + 1][...].astype(jnp.float32)   # (F_out, 1)
            wts.append(wt)
            bbs.append(jnp.broadcast_to(b, (b.shape[0], chunk)))  # (F_out, chunk)

        def body(c, carry):
            start = pl.multiple_of(c * chunk, chunk)
            h = x_ref[:, pl.ds(start, chunk)].astype(jnp.float32)  # (F_in, chunk)
            for li in range(num_linear_layers):
                wt = wts[li]
                bb = bbs[li]
                if wt.shape[1] == 1:
                    # K == 1: outer-product via VPU broadcast multiply-add.
                    h = wt * h + bb
                else:
                    h = jnp.dot(wt, h, preferred_element_type=jnp.float32) + bb
                if li < num_linear_layers - 1:
                    h = jnp.tanh(h)
            out_ref[:, pl.ds(start, chunk)] = h.astype(out_ref.dtype)
            return carry

        lax.fori_loop(0, num_chunks, body, 0, unroll=True)

    return kernel


def init_pinn_params(key, layers):
    """Parameter init mirroring torch.nn.Linear defaults
    (uniform in [-1/sqrt(fan_in), 1/sqrt(fan_in)]), stored transposed:
    W^T: (fan_out, fan_in), b: (fan_out, 1)."""
    params_t = []
    for i in range(len(layers) - 1):
        fan_in, fan_out = layers[i], layers[i + 1]
        bound = 1.0 / (fan_in ** 0.5)
        key, kw, kb = jax.random.split(key, 3)
        wt = jax.random.uniform(kw, (fan_out, fan_in), jnp.float32, -bound, bound)
        b = jax.random.uniform(kb, (fan_out, 1), jnp.float32, -bound, bound)
        params_t.extend([wt, b])
    return tuple(params_t)


@functools.partial(jax.jit, static_argnames=("chunk", "max_block"))
def pinn_forward(x, params_t, *, chunk=512, max_block=8192):
    """Forward pass of GrossPitaevskiiPINN via a single Pallas kernel.

    x        : (N, layers[0]) float32 (any N; padded internally)
    params_t : flat tuple (wT0, b0, wT1, b1, ...) in transposed layout
    returns  : (N, layers[-1]) float32
    """
    N, f_in = x.shape
    num_linear = len(params_t) // 2
    f_out = params_t[-2].shape[0]

    # Generation-aware grid: one maximal block per TensorCore (v5e/v6e: 1,
    # v4/v5p/v7x: 2), more blocks only when a block would exceed max_block
    # lanes; keep the step count a multiple of the TC count for balance.
    tc = _tensorcores_per_chip()
    blocks = max(min(tc, pl.cdiv(N, chunk)), pl.cdiv(N, max_block), 1)
    blocks = _round_up(blocks, tc)
    block_n = _round_up(pl.cdiv(N, blocks), chunk)
    n_pad = blocks * block_n
    grid = (blocks,)

    # Batch-on-lanes layout: (F_in, N_pad).  For f_in == 1 the transpose is a
    # pure reshape (no HBM copy); zero-pad only the ragged point axis.
    if f_in == 1:
        xt = x.reshape(1, N).astype(jnp.float32)
    else:
        xt = x.T.astype(jnp.float32)
    if n_pad != N:
        xt = jnp.pad(xt, ((0, 0), (0, n_pad - N)))

    in_specs = [pl.BlockSpec((f_in, block_n), lambda i: (0, i))]
    for p in params_t:
        # Weights / biases are tiny: keep the full array resident every step.
        in_specs.append(pl.BlockSpec(p.shape, lambda i: (0, 0)))
    out_spec = pl.BlockSpec((f_out, block_n), lambda i: (0, i))

    # Advisory cost hint for XLA scheduling around this custom call.
    dims = [params_t[0].shape[1]] + [params_t[2 * i].shape[0] for i in range(num_linear)]
    flops = 2 * n_pad * sum(dims[i] * dims[i + 1] for i in range(num_linear))
    transcendentals = n_pad * sum(dims[1:-1])
    param_bytes = sum(int(p.size) * p.dtype.itemsize for p in params_t)
    bytes_accessed = 4 * n_pad * (dims[0] + dims[-1]) + param_bytes

    out_t = pl.pallas_call(
        _make_mlp_kernel(num_linear, chunk),
        out_shape=jax.ShapeDtypeStruct((f_out, n_pad), jnp.float32),
        grid_spec=pltpu.PrefetchScalarGridSpec(
            num_scalar_prefetch=0,
            grid=grid,
            in_specs=in_specs,
            out_specs=out_spec,
        ),
        compiler_params=pltpu.CompilerParams(
            dimension_semantics=("parallel",),
        ),
        cost_estimate=pl.CostEstimate(
            flops=flops,
            transcendentals=transcendentals,
            bytes_accessed=bytes_accessed,
        ),
    )(xt, *params_t)

    if f_out == 1:
        return out_t[:, :N].reshape(N, 1)  # reshape == transpose for (1, N)
    return out_t[:, :N].T


def pinn_forward_ref(x, params_t):
    """Pure-JAX reference of the same MLP (transposed params) for checking."""
    num_linear = len(params_t) // 2
    h = x.astype(jnp.float32)
    for li in range(num_linear):
        wt = params_t[2 * li]       # (F_out, F_in)
        b = params_t[2 * li + 1]    # (F_out, 1)
        h = h @ wt.T + b.T
        if li < num_linear - 1:
            h = jnp.tanh(h)
    return h


if __name__ == "__main__":
    # PINN architecture: 1 -> hidden -> ... -> 1 over 1-D collocation points.
    layers = [1, 32, 32, 32, 1]

    key = jax.random.PRNGKey(0)
    key, kp = jax.random.split(key)
    params_t = init_pinn_params(kp, layers)

    # Test an aligned batch and a ragged batch of collocation points.
    for N in (2048, 1000):
        key, kx = jax.random.split(key)
        # collocation points x in [-1, 10), shape (N, 1) — like the PINN inputs
        x = jax.random.uniform(kx, (N, layers[0]), jnp.float32, -1.0, 10.0)

        out = jax.block_until_ready(pinn_forward(x, params_t))
        ref = pinn_forward_ref(x, params_t)

        assert out.shape == (N, layers[-1])
        max_err = float(jnp.max(jnp.abs(out - ref)))
        assert jnp.allclose(out, ref, atol=1e-5, rtol=1e-4), max_err

    # TODO(synk): riesz_loss / pde_residual / boundary losses need autodiff
    # w.r.t. inputs (jax.grad) and scipy Airy functions; they stay outside
    # the kernel in plain JAX.
    print("KERNEL_OK")
</pallas_src>

<mosaic_0001>
module attributes {stable_mosaic.version = 11 : i64} {
  func.func @kernel(%arg0: i32, %arg1: memref<1x2048xf32, #tpu.memory_space<vmem>>, %arg2: memref<32x1xf32, #tpu.memory_space<vmem>>, %arg3: memref<32x1xf32, #tpu.memory_space<vmem>>, %arg4: memref<32x32xf32, #tpu.memory_space<vmem>>, %arg5: memref<32x1xf32, #tpu.memory_space<vmem>>, %arg6: memref<32x32xf32, #tpu.memory_space<vmem>>, %arg7: memref<32x1xf32, #tpu.memory_space<vmem>>, %arg8: memref<1x32xf32, #tpu.memory_space<vmem>>, %arg9: memref<1x1xf32, #tpu.memory_space<vmem>>, %arg10: memref<1x2048xf32, #tpu.memory_space<vmem>>) attributes {dimension_semantics = [#tpu.dimension_semantics<parallel>], iteration_bounds = array<i64: 1>, scalar_prefetch = 0 : i64, scratch_operands = 0 : i64, tpu.core_type = #tpu.core_type<tc>, window_params = [{transform_indices = @transform_0, window_bounds = array<i64: 1, 2048>}, {pipeline_mode = #tpu.pipeline_mode<synchronous>, transform_indices = @transform_1, window_bounds = array<i64: 32, 1>}, {pipeline_mode = #tpu.pipeline_mode<synchronous>, transform_indices = @transform_2, window_bounds = array<i64: 32, 1>}, {pipeline_mode = #tpu.pipeline_mode<synchronous>, transform_indices = @transform_3, window_bounds = array<i64: 32, 32>}, {pipeline_mode = #tpu.pipeline_mode<synchronous>, transform_indices = @transform_4, window_bounds = array<i64: 32, 1>}, {pipeline_mode = #tpu.pipeline_mode<synchronous>, transform_indices = @transform_5, window_bounds = array<i64: 32, 32>}, {pipeline_mode = #tpu.pipeline_mode<synchronous>, transform_indices = @transform_6, window_bounds = array<i64: 32, 1>}, {pipeline_mode = #tpu.pipeline_mode<synchronous>, transform_indices = @transform_7, window_bounds = array<i64: 1, 32>}, {pipeline_mode = #tpu.pipeline_mode<synchronous>, transform_indices = @transform_8, window_bounds = array<i64: 1, 1>}, {transform_indices = @transform_9, window_bounds = array<i64: 1, 2048>}]} {
    %c0 = arith.constant 0 : index
    %c0_0 = arith.constant 0 : index
    %0 = vector.load %arg2[%c0, %c0_0] : memref<32x1xf32, #tpu.memory_space<vmem>>, vector<32x1xf32>
    %c0_1 = arith.constant 0 : index
    %c0_2 = arith.constant 0 : index
    %1 = vector.load %arg3[%c0_1, %c0_2] : memref<32x1xf32, #tpu.memory_space<vmem>>, vector<32x1xf32>
    %2 = vector.shape_cast %1 : vector<32x1xf32> to vector<32x1xf32>
    %3 = vector.broadcast %2 : vector<32x1xf32> to vector<32x512xf32>
    %c0_3 = arith.constant 0 : index
    %c0_4 = arith.constant 0 : index
    %4 = vector.load %arg4[%c0_3, %c0_4] : memref<32x32xf32, #tpu.memory_space<vmem>>, vector<32x32xf32>
    %c0_5 = arith.constant 0 : index
    %c0_6 = arith.constant 0 : index
    %5 = vector.load %arg5[%c0_5, %c0_6] : memref<32x1xf32, #tpu.memory_space<vmem>>, vector<32x1xf32>
    %6 = vector.shape_cast %5 : vector<32x1xf32> to vector<32x1xf32>
    %7 = vector.broadcast %6 : vector<32x1xf32> to vector<32x512xf32>
    %c0_7 = arith.constant 0 : index
    %c0_8 = arith.constant 0 : index
    %8 = vector.load %arg6[%c0_7, %c0_8] : memref<32x32xf32, #tpu.memory_space<vmem>>, vector<32x32xf32>
    %c0_9 = arith.constant 0 : index
    %c0_10 = arith.constant 0 : index
    %9 = vector.load %arg7[%c0_9, %c0_10] : memref<32x1xf32, #tpu.memory_space<vmem>>, vector<32x1xf32>
    %10 = vector.shape_cast %9 : vector<32x1xf32> to vector<32x1xf32>
    %11 = vector.broadcast %10 : vector<32x1xf32> to vector<32x512xf32>
    %c0_11 = arith.constant 0 : index
    %c0_12 = arith.constant 0 : index
    %12 = vector.load %arg8[%c0_11, %c0_12] : memref<1x32xf32, #tpu.memory_space<vmem>>, vector<1x32xf32>
    %c0_13 = arith.constant 0 : index
    %c0_14 = arith.constant 0 : index
    %13 = vector.load %arg9[%c0_13, %c0_14] : memref<1x1xf32, #tpu.memory_space<vmem>>, vector<1x1xf32>
    %14 = vector.shape_cast %13 : vector<1x1xf32> to vector<1x1xf32>
    %15 = vector.broadcast %14 : vector<1x1xf32> to vector<1x512xf32>
    %c0_i32 = arith.constant 0 : i32
    %c512_i32 = arith.constant 512 : i32
    %16 = arith.muli %c0_i32, %c512_i32 : i32
    %17 = tpu.assume_multiple %16, 512 : i32
    %c0_15 = arith.constant 0 : index
    %18 = arith.index_cast %17 : i32 to index
    %19 = vector.load %arg1[%c0_15, %18] : memref<1x2048xf32, #tpu.memory_space<vmem>>, vector<1x512xf32>
    %20 = vector.broadcast %0 : vector<32x1xf32> to vector<32x512xf32>
    %21 = vector.broadcast %19 : vector<1x512xf32> to vector<32x512xf32>
    %22 = arith.mulf %20, %21 : vector<32x512xf32>
    %23 = arith.addf %22, %3 : vector<32x512xf32>
    %24 = math.tanh %23 : vector<32x512xf32>
    %cst = arith.constant dense<0.000000e+00> : vector<32x512xf32>
    %25 = tpu.matmul %4, %24, %cst {dimension_numbers = #tpu.dot_dimension_numbers<[1], [0], [0], [1], [0, 0, 1, 1], [], []>} : vector<32x32xf32>, vector<32x512xf32>, vector<32x512xf32> -> vector<32x512xf32>
    %26 = arith.addf %25, %7 : vector<32x512xf32>
    %27 = math.tanh %26 : vector<32x512xf32>
    %cst_16 = arith.constant dense<0.000000e+00> : vector<32x512xf32>
    %28 = tpu.matmul %8, %27, %cst_16 {dimension_numbers = #tpu.dot_dimension_numbers<[1], [0], [0], [1], [0, 0, 1, 1], [], []>} : vector<32x32xf32>, vector<32x512xf32>, vector<32x512xf32> -> vector<32x512xf32>
    %29 = arith.addf %28, %11 : vector<32x512xf32>
    %30 = math.tanh %29 : vector<32x512xf32>
    %cst_17 = arith.constant dense<0.000000e+00> : vector<1x512xf32>
    %31 = tpu.matmul %12, %30, %cst_17 {dimension_numbers = #tpu.dot_dimension_numbers<[1], [0], [0], [1], [0, 0, 1, 1], [], []>} : vector<1x32xf32>, vector<32x512xf32>, vector<1x512xf32> -> vector<1x512xf32>
    %32 = arith.addf %31, %15 : vector<1x512xf32>
    %c0_18 = arith.constant 0 : index
    %33 = arith.index_cast %17 : i32 to index
    %34 = vector.load %arg10[%c0_18, %33] : memref<1x2048xf32, #tpu.memory_space<vmem>>, vector<1x512xf32>
    tpu.vector_store %arg10[%c0_18, %33], %32 {strides = array<i32>} : memref<1x2048xf32, #tpu.memory_space<vmem>>, vector<1x512xf32>,
    %c1_i32 = arith.constant 1 : i32
    %c512_i32_19 = arith.constant 512 : i32
    %35 = arith.muli %c1_i32, %c512_i32_19 : i32
    %36 = tpu.assume_multiple %35, 512 : i32
    %c0_20 = arith.constant 0 : index
    %37 = arith.index_cast %36 : i32 to index
    %38 = vector.load %arg1[%c0_20, %37] : memref<1x2048xf32, #tpu.memory_space<vmem>>, vector<1x512xf32>
    %39 = vector.broadcast %0 : vector<32x1xf32> to vector<32x512xf32>
    %40 = vector.broadcast %38 : vector<1x512xf32> to vector<32x512xf32>
    %41 = arith.mulf %39, %40 : vector<32x512xf32>
    %42 = arith.addf %41, %3 : vector<32x512xf32>
    %43 = math.tanh %42 : vector<32x512xf32>
    %cst_21 = arith.constant dense<0.000000e+00> : vector<32x512xf32>
    %44 = tpu.matmul %4, %43, %cst_21 {dimension_numbers = #tpu.dot_dimension_numbers<[1], [0], [0], [1], [0, 0, 1, 1], [], []>} : vector<32x32xf32>, vector<32x512xf32>, vector<32x512xf32> -> vector<32x512xf32>
    %45 = arith.addf %44, %7 : vector<32x512xf32>
    %46 = math.tanh %45 : vector<32x512xf32>
    %cst_22 = arith.constant dense<0.000000e+00> : vector<32x512xf32>
    %47 = tpu.matmul %8, %46, %cst_22 {dimension_numbers = #tpu.dot_dimension_numbers<[1], [0], [0], [1], [0, 0, 1, 1], [], []>} : vector<32x32xf32>, vector<32x512xf32>, vector<32x512xf32> -> vector<32x512xf32>
    %48 = arith.addf %47, %11 : vector<32x512xf32>
    %49 = math.tanh %48 : vector<32x512xf32>
    %cst_23 = arith.constant dense<0.000000e+00> : vector<1x512xf32>
    %50 = tpu.matmul %12, %49, %cst_23 {dimension_numbers = #tpu.dot_dimension_numbers<[1], [0], [0], [1], [0, 0, 1, 1], [], []>} : vector<1x32xf32>, vector<32x512xf32>, vector<1x512xf32> -> vector<1x512xf32>
    %51 = arith.addf %50, %15 : vector<1x512xf32>
    %c0_24 = arith.constant 0 : index
    %52 = arith.index_cast %36 : i32 to index
    %53 = vector.load %arg10[%c0_24, %52] : memref<1x2048xf32, #tpu.memory_space<vmem>>, vector<1x512xf32>
    tpu.vector_store %arg10[%c0_24, %52], %51 {strides = array<i32>} : memref<1x2048xf32, #tpu.memory_space<vmem>>, vector<1x512xf32>,
    %c2_i32 = arith.constant 2 : i32
    %c512_i32_25 = arith.constant 512 : i32
    %54 = arith.muli %c2_i32, %c512_i32_25 : i32
    %55 = tpu.assume_multiple %54, 512 : i32
    %c0_26 = arith.constant 0 : index
    %56 = arith.index_cast %55 : i32 to index
    %57 = vector.load %arg1[%c0_26, %56] : memref<1x2048xf32, #tpu.memory_space<vmem>>, vector<1x512xf32>
    %58 = vector.broadcast %0 : vector<32x1xf32> to vector<32x512xf32>
    %59 = vector.broadcast %57 : vector<1x512xf32> to vector<32x512xf32>
    %60 = arith.mulf %58, %59 : vector<32x512xf32>
    %61 = arith.addf %60, %3 : vector<32x512xf32>
    %62 = math.tanh %61 : vector<32x512xf32>
    %cst_27 = arith.constant dense<0.000000e+00> : vector<32x512xf32>
    %63 = tpu.matmul %4, %62, %cst_27 {dimension_numbers = #tpu.dot_dimension_numbers<[1], [0], [0], [1], [0, 0, 1, 1], [], []>} : vector<32x32xf32>, vector<32x512xf32>, vector<32x512xf32> -> vector<32x512xf32>
    %64 = arith.addf %63, %7 : vector<32x512xf32>
    %65 = math.tanh %64 : vector<32x512xf32>
    %cst_28 = arith.constant dense<0.000000e+00> : vector<32x512xf32>
    %66 = tpu.matmul %8, %65, %cst_28 {dimension_numbers = #tpu.dot_dimension_numbers<[1], [0], [0], [1], [0, 0, 1, 1], [], []>} : vector<32x32xf32>, vector<32x512xf32>, vector<32x512xf32> -> vector<32x512xf32>
    %67 = arith.addf %66, %11 : vector<32x512xf32>
    %68 = math.tanh %67 : vector<32x512xf32>
    %cst_29 = arith.constant dense<0.000000e+00> : vector<1x512xf32>
    %69 = tpu.matmul %12, %68, %cst_29 {dimension_numbers = #tpu.dot_dimension_numbers<[1], [0], [0], [1], [0, 0, 1, 1], [], []>} : vector<1x32xf32>, vector<32x512xf32>, vector<1x512xf32> -> vector<1x512xf32>
    %70 = arith.addf %69, %15 : vector<1x512xf32>
    %c0_30 = arith.constant 0 : index
    %71 = arith.index_cast %55 : i32 to index
    %72 = vector.load %arg10[%c0_30, %71] : memref<1x2048xf32, #tpu.memory_space<vmem>>, vector<1x512xf32>
    tpu.vector_store %arg10[%c0_30, %71], %70 {strides = array<i32>} : memref<1x2048xf32, #tpu.memory_space<vmem>>, vector<1x512xf32>,
    %c3_i32 = arith.constant 3 : i32
    %c512_i32_31 = arith.constant 512 : i32
    %73 = arith.muli %c3_i32, %c512_i32_31 : i32
    %74 = tpu.assume_multiple %73, 512 : i32
    %c0_32 = arith.constant 0 : index
    %75 = arith.index_cast %74 : i32 to index
    %76 = vector.load %arg1[%c0_32, %75] : memref<1x2048xf32, #tpu.memory_space<vmem>>, vector<1x512xf32>
    %77 = vector.broadcast %0 : vector<32x1xf32> to vector<32x512xf32>
    %78 = vector.broadcast %76 : vector<1x512xf32> to vector<32x512xf32>
    %79 = arith.mulf %77, %78 : vector<32x512xf32>
    %80 = arith.addf %79, %3 : vector<32x512xf32>
    %81 = math.tanh %80 : vector<32x512xf32>
    %cst_33 = arith.constant dense<0.000000e+00> : vector<32x512xf32>
    %82 = tpu.matmul %4, %81, %cst_33 {dimension_numbers = #tpu.dot_dimension_numbers<[1], [0], [0], [1], [0, 0, 1, 1], [], []>} : vector<32x32xf32>, vector<32x512xf32>, vector<32x512xf32> -> vector<32x512xf32>
    %83 = arith.addf %82, %7 : vector<32x512xf32>
    %84 = math.tanh %83 : vector<32x512xf32>
    %cst_34 = arith.constant dense<0.000000e+00> : vector<32x512xf32>
    %85 = tpu.matmul %8, %84, %cst_34 {dimension_numbers = #tpu.dot_dimension_numbers<[1], [0], [0], [1], [0, 0, 1, 1], [], []>} : vector<32x32xf32>, vector<32x512xf32>, vector<32x512xf32> -> vector<32x512xf32>
    %86 = arith.addf %85, %11 : vector<32x512xf32>
    %87 = math.tanh %86 : vector<32x512xf32>
    %cst_35 = arith.constant dense<0.000000e+00> : vector<1x512xf32>
    %88 = tpu.matmul %12, %87, %cst_35 {dimension_numbers = #tpu.dot_dimension_numbers<[1], [0], [0], [1], [0, 0, 1, 1], [], []>} : vector<1x32xf32>, vector<32x512xf32>, vector<1x512xf32> -> vector<1x512xf32>
    %89 = arith.addf %88, %15 : vector<1x512xf32>
    %c0_36 = arith.constant 0 : index
    %90 = arith.index_cast %74 : i32 to index
    %91 = vector.load %arg10[%c0_36, %90] : memref<1x2048xf32, #tpu.memory_space<vmem>>, vector<1x512xf32>
    tpu.vector_store %arg10[%c0_36, %90], %89 {strides = array<i32>} : memref<1x2048xf32, #tpu.memory_space<vmem>>, vector<1x512xf32>,
    %c4_i32 = arith.constant 4 : i32
    return
  }
  func.func @transform_0(%arg0: i32) -> (i32, i32) {
    %c0_i32 = arith.constant 0 : i32
    %c0_i32_0 = arith.constant 0 : i32
    return %c0_i32, %arg0 : i32, i32
  }
  func.func @transform_1(%arg0: i32) -> (i32, i32) {
    %c0_i32 = arith.constant 0 : i32
    %c0_i32_0 = arith.constant 0 : i32
    %c0_i32_1 = arith.constant 0 : i32
    return %c0_i32, %c0_i32_0 : i32, i32
  }
  func.func @transform_2(%arg0: i32) -> (i32, i32) {
    %c0_i32 = arith.constant 0 : i32
    %c0_i32_0 = arith.constant 0 : i32
    %c0_i32_1 = arith.constant 0 : i32
    return %c0_i32, %c0_i32_0 : i32, i32
  }
  func.func @transform_3(%arg0: i32) -> (i32, i32) {
    %c0_i32 = arith.constant 0 : i32
    %c0_i32_0 = arith.constant 0 : i32
    %c0_i32_1 = arith.constant 0 : i32
    return %c0_i32, %c0_i32_0 : i32, i32
  }
  func.func @transform_4(%arg0: i32) -> (i32, i32) {
    %c0_i32 = arith.constant 0 : i32
    %c0_i32_0 = arith.constant 0 : i32
    %c0_i32_1 = arith.constant 0 : i32
    return %c0_i32, %c0_i32_0 : i32, i32
  }
  func.func @transform_5(%arg0: i32) -> (i32, i32) {
    %c0_i32 = arith.constant 0 : i32
    %c0_i32_0 = arith.constant 0 : i32
    %c0_i32_1 = arith.constant 0 : i32
    return %c0_i32, %c0_i32_0 : i32, i32
  }
  func.func @transform_6(%arg0: i32) -> (i32, i32) {
    %c0_i32 = arith.constant 0 : i32
    %c0_i32_0 = arith.constant 0 : i32
    %c0_i32_1 = arith.constant 0 : i32
    return %c0_i32, %c0_i32_0 : i32, i32
  }
  func.func @transform_7(%arg0: i32) -> (i32, i32) {
    %c0_i32 = arith.constant 0 : i32
    %c0_i32_0 = arith.constant 0 : i32
    %c0_i32_1 = arith.constant 0 : i32
    return %c0_i32, %c0_i32_0 : i32, i32
  }
  func.func @transform_8(%arg0: i32) -> (i32, i32) {
    %c0_i32 = arith.constant 0 : i32
    %c0_i32_0 = arith.constant 0 : i32
    %c0_i32_1 = arith.constant 0 : i32
    return %c0_i32, %c0_i32_0 : i32, i32
  }
  func.func @transform_9(%arg0: i32) -> (i32, i32) {
    %c0_i32 = arith.constant 0 : i32
    %c0_i32_0 = arith.constant 0 : i32
    return %c0_i32, %arg0 : i32, i32
  }
}

</mosaic_0001>

<bundles_post_ra>
// kernel: pinn_forward.1
= control target key start
LH: loop header
LB: loop body
LE: loop exit
PB: predicated region body
PF: predicated region fallthrough
CT: control target
= control target key end

     0   :  { %s4616_s0 = inlined_call_operand.vmem [shape: f32[1,2048], index: 0, kind: input, shape index: {}]   ;;  %s4617_s1 = inlined_call_operand.vmem [shape: f32[32,1], index: 1, kind: input, shape index: {}]   ;;  %s4618_s2 = inlined_call_operand.vmem [shape: f32[32,1], index: 2, kind: input, shape index: {}]   ;;  %s4619_s3 = inlined_call_operand.vmem [shape: f32[32,32], index: 3, kind: input, shape index: {}]   ;;  %s4620_s4 = inlined_call_operand.vmem [shape: f32[32,1], index: 4, kind: input, shape index: {}]   ;;  %s4621_s5 = inlined_call_operand.vmem [shape: f32[32,32], index: 5, kind: input, shape index: {}]   ;;  %s4622_s6 = inlined_call_operand.vmem [shape: f32[32,1], index: 6, kind: input, shape index: {}]   ;;  %s4623_s7 = inlined_call_operand.vmem [shape: f32[1,32], index: 7, kind: input, shape index: {}]   ;;  %s4624_s8 = inlined_call_operand.<no memory space> [shape: f32[1,1], index: 8, kind: input, shape index: {}]   ;;  %s4625_s9 = inlined_call_operand.hbm [shape: f32[1,2048], index: 9, kind: output, shape index: {}]  }
   0x1   :  { %v14_v0 = vstv %s4624_s8 }
   0x2   :  { %15 = vst [vmem:[#allocation2] sm:$0x1] %v14_v0 }
   0x3   :  { %v39_v1 = vld [vmem:[%s4618_s2] sm:$0xff]  ;;  %v3412_v3 = vmov 0   ;;  %v40_v4 = vld [vmem:[%s4618_s2 + $0x8] sm:$0xff] }
   0x4   :  { %v35_v2 = vld [vmem:[%s4617_s1] sm:$0xff]  ;;  %2994 = vset.pattern.permute.xlu1 %v3412_v3  ;;  %2993 = vset.pattern.permute.xlu0 %v3412_v3  ;;  %v36_v5 = vld [vmem:[%s4617_s1 + $0x8] sm:$0xff] }
   0x5   :  { %45 = vperm.xlu1 %2994, %v39_v1   ;;  %133 = vperm.xlu0 %2993, %v35_v2  }
   0x9   :  { %50 = vperm.xlu1 %2994, %v40_v4   ;;  %138 = vperm.xlu0 %2993, %v36_v5  }
   0xa   :  { %16 = vsyncpa [#allocation4], 0  ;;  %v38_v6 = vld [vmem:[%s4617_s1 + $0x18] sm:$0xff]  ;;  %v37_v7 = vld [vmem:[%s4617_s1 + $0x10] sm:$0xff]  ;;  %v4627_v19 = vmov 0.0   ;;  %v4626_v20 = vlaneseq  ;;  %vm220_vm0 = vcmask 261120  }
   0xb   :  { %v42_v8 = vld [vmem:[%s4618_s2 + $0x18] sm:$0xff]  ;;  %v41_v9 = vld [vmem:[%s4618_s2 + $0x10] sm:$0xff]  ;;  %v68_v10 = vld [vmem:[%s4620_s4 + $0x8] sm:$0xff]  ;;  %297 = vmatprep.mubr.f32.mxu0 %v4627_v19  ;;  %386 = vmatprep.mubr.f32.mxu1 %v4627_v19 }
   0xc   :  { %v67_v11 = vld [vmem:[%s4620_s4] sm:$0xff]  ;;  %v70_v12 = vld [vmem:[%s4620_s4 + $0x18] sm:$0xff]  ;;  %v69_v13 = vld [vmem:[%s4620_s4 + $0x10] sm:$0xff]  ;;  %v3520_v21 = vshrl.u32 %v4626_v20, 7 }
   0xd   :  { %148 = vperm.xlu1 %2994, %v38_v6   ;;  %143 = vperm.xlu0 %2993, %v37_v7   ;;  %v96_v14 = vld [vmem:[%s4622_s6 + $0x8] sm:$0xff]  ;;  %v95_v15 = vld [vmem:[%s4622_s6] sm:$0xff]  ;;  %v98_v16 = vld [vmem:[%s4622_s6 + $0x18] sm:$0xff] }
   0xe   :  { %v97_v17 = vld [vmem:[%s4622_s6 + $0x10] sm:$0xff]  ;;  %v120_v18 = vld [vmem:[#allocation2] sm:$0x1]  ;;  %v158_v22 = vsub.s32 1, %v3520_v21  ;;  %v166_v23 = vsub.s32 3, %v3520_v21  ;;  %v3525_v24 = vsub.s32 0, %v3520_v21 }
   0xf   :  { %v3528_v25 = vsub.s32 2, %v3520_v21  ;;  %v130_v26 = vld [vmem:[%s4616_s0] sm:$0xf]  ;;  %v2740_v27 = vld [vmem:[%s4616_s0 + $0x4] sm:$0xf] }
  0x10   :  { %v2759_v28 = vld [vmem:[%s4616_s0 + $0x8] sm:$0xf]  ;;  %v159_v29 = vrot.slane %v130_v26, %v158_v22  ;;  %v167_v30 = vrot.slane %v130_v26, %v166_v23  ;;  %v155_v31 = vrot.slane %v130_v26, %v3525_v24  ;;  %v3544_v33 = vld [vmem:[%s4616_s0 + $0xc] sm:$0xf]  ;;  %v3546_v34 = vrot.slane %v2740_v27, %v158_v22 }
  0x11   :  { %60 = vperm.xlu1 %2994, %v42_v8   ;;  %55 = vperm.xlu0 %2993, %v41_v9   ;;  %v163_v32 = vrot.slane %v130_v26, %v3528_v25  ;;  %v3548_v35 = vrot.slane %v2740_v27, %v166_v23  ;;  %v3551_v36 = vrot.slane %v2740_v27, %v3525_v24 }
  0x12   :  { %v3554_v37 = vrot.slane %v2740_v27, %v3528_v25  ;;  %v3556_v38 = vrot.slane %v2759_v28, %v158_v22  ;;  %v3558_v39 = vrot.slane %v2759_v28, %v166_v23  ;;  %v3561_v40 = vrot.slane %v2759_v28, %v3525_v24 }
  0x13   :  { %v3568_v43 = vrot.slane %v2759_v28, %v3528_v25  ;;  %v3571_v44 = vrot.slane %v3544_v33, %v158_v22  ;;  %v3574_v45 = vrot.slane %v3544_v33, %v166_v23  ;;  %v3578_v46 = vrot.slane %v3544_v33, %v3525_v24 }
  0x15   :  { %78 = vperm.xlu1 %2994, %v68_v10   ;;  %73 = vperm.xlu0 %2993, %v67_v11  }
  0x19   :  { %88 = vperm.xlu1 %2994, %v70_v12   ;;  %83 = vperm.xlu0 %2993, %v69_v13  }
  0x1d   :  { %106 = vperm.xlu1 %2994, %v96_v14   ;;  %101 = vperm.xlu0 %2993, %v95_v15  }
  0x21   :  { %116 = vperm.xlu1 %2994, %v98_v16   ;;  %111 = vperm.xlu0 %2993, %v97_v17  }
  0x25   :  { %123 = vperm.xlu0 %2993, %v120_v18  }
  0x84   :  { %v3563_v41 = vpop.permute.xlu1 %45  ;;  %v3565_v42 = vpop.permute.xlu0 %133 }
  0x85   :  { %v173_v47 = vmul.f32 %v159_v29, %v3565_v42  ;;  %v175_v48 = vmul.f32 %v167_v30, %v3565_v42  ;;  %v172_v49 = vmul.f32 %v155_v31, %v3565_v42  ;;  %v174_v50 = vmul.f32 %v163_v32, %v3565_v42 }
  0x86   :  { %v836_v51 = vmul.f32 %v3546_v34, %v3565_v42  ;;  %v838_v52 = vmul.f32 %v3548_v35, %v3565_v42  ;;  %v835_v53 = vmul.f32 %v3551_v36, %v3565_v42  ;;  %v837_v54 = vmul.f32 %v3554_v37, %v3565_v42 }
  0x87   :  { %v189_v55 = vadd.f32 %v173_v47, %v3563_v41  ;;  %v191_v56 = vadd.f32 %v175_v48, %v3563_v41  ;;  %v188_v57 = vadd.f32 %v172_v49, %v3563_v41  ;;  %v190_v58 = vadd.f32 %v174_v50, %v3563_v41 }
  0x88   :  { %v3596_v59 = vpop.permute.xlu1 %50  ;;  %v3598_v60 = vpop.permute.xlu0 %138  ;;  %v3601_v61 = vadd.f32 %v836_v51, %v3563_v41  ;;  %v3604_v62 = vadd.f32 %v838_v52, %v3563_v41  ;;  %v3607_v63 = vadd.f32 %v835_v53, %v3563_v41  ;;  %v3610_v0 = vadd.f32 %v837_v54, %v3563_v41 }
  0x89   :  { %v177_v1 = vmul.f32 %v159_v29, %v3598_v60  ;;  %2995 = vtanh.f32 %v189_v55  ;;  %v179_v2 = vmul.f32 %v167_v30, %v3598_v60  ;;  %v176_v3 = vmul.f32 %v155_v31, %v3598_v60 }
  0x8a   :  { %2997 = vtanh.f32 %v191_v56  ;;  %v178_v4 = vmul.f32 %v163_v32, %v3598_v60  ;;  %v840_v5 = vmul.f32 %v3546_v34, %v3598_v60  ;;  %v842_v6 = vmul.f32 %v3548_v35, %v3598_v60 }
  0x8b   :  { %v193_v7 = vadd.f32 %v177_v1, %v3596_v59  ;;  %v195_v8 = vadd.f32 %v179_v2, %v3596_v59  ;;  %v192_v9 = vadd.f32 %v176_v3, %v3596_v59  ;;  %2999 = vtanh.f32 %v188_v57 }
  0x8c   :  { %v3623_v10 = vpop.permute.xlu1 %148  ;;  %v3625_v11 = vpop.permute.xlu0 %143  ;;  %v194_v12 = vadd.f32 %v178_v4, %v3596_v59  ;;  %3001 = vtanh.f32 %v190_v58  ;;  %v3629_v13 = vadd.f32 %v840_v5, %v3596_v59  ;;  %v3632_v14 = vadd.f32 %v842_v6, %v3596_v59 }
  0x8d   :  { %3003 = vtanh.f32 %v193_v7  ;;  %v181_v15 = vmul.f32 %v159_v29, %v3625_v11  ;;  %v185_v16 = vmul.f32 %v159_v29, %v3623_v10  ;;  %v183_v17 = vmul.f32 %v167_v30, %v3625_v11 }
  0x8e   :  { %3005 = vtanh.f32 %v195_v8  ;;  %v187_v18 = vmul.f32 %v167_v30, %v3623_v10  ;;  %v180_v22 = vmul.f32 %v155_v31, %v3625_v11  ;;  %v184_v23 = vmul.f32 %v155_v31, %v3623_v10 }
  0x8f   :  { %3007 = vtanh.f32 %v192_v9  ;;  %v182_v26 = vmul.f32 %v163_v32, %v3625_v11  ;;  %v186_v27 = vmul.f32 %v163_v32, %v3623_v10  ;;  %v839_v28 = vmul.f32 %v3551_v36, %v3598_v60 }
  0x90   :  { %v3644_v47 = vpop.permute.xlu1 %60  ;;  %v3646_v29 = vpop.permute.xlu0 %55  ;;  %3009 = vtanh.f32 %v194_v12  ;;  %v841_v30 = vmul.f32 %v3554_v37, %v3598_v60  ;;  %v844_v48 = vmul.f32 %v3546_v34, %v3625_v11  ;;  %v848_v31 = vmul.f32 %v3546_v34, %v3623_v10 }
  0x91   :  { %v197_v49 = vadd.f32 %v181_v15, %v3646_v29  ;;  %v201_v32 = vadd.f32 %v185_v16, %v3644_v47  ;;  %v199_v50 = vadd.f32 %v183_v17, %v3646_v29  ;;  %v203_v51 = vadd.f32 %v187_v18, %v3644_v47 }
  0x92   :  { %v196_v52 = vadd.f32 %v180_v22, %v3646_v29  ;;  %v200_v53 = vadd.f32 %v184_v23, %v3644_v47  ;;  %v198_v54 = vadd.f32 %v182_v26, %v3646_v29  ;;  %v202_v55 = vadd.f32 %v186_v27, %v3644_v47 }
  0x93   :  { %v2996_v56 = vpop.eup %2995  ;;  %3011 = vtanh.f32 %v197_v49  ;;  %v3663_v34 = vadd.f32 %v839_v28, %v3596_v59  ;;  %v3666_v57 = vadd.f32 %v841_v30, %v3596_v59  ;;  %v3669_v58 = vadd.f32 %v844_v48, %v3646_v29 }
  0x94   :  { %v2998_v1 = vpop.eup %2997  ;;  %3013 = vtanh.f32 %v201_v32  ;;  %v3672_v2 = vadd.f32 %v848_v31, %v3644_v47  ;;  %v846_v3 = vmul.f32 %v3548_v35, %v3625_v11  ;;  %v850_v4 = vmul.f32 %v3548_v35, %v3623_v10 }
  0x95   :  { %v3000_v5 = vpop.eup %2999  ;;  %3015 = vtanh.f32 %v199_v50  ;;  %v843_v6 = vmul.f32 %v3551_v36, %v3625_v11  ;;  %v847_v7 = vmul.f32 %v3551_v36, %v3623_v10  ;;  %v845_v8 = vmul.f32 %v3554_v37, %v3625_v11 }
  0x96   :  { %v3002_v9 = vpop.eup %3001  ;;  %3017 = vtanh.f32 %v203_v51  ;;  %v3685_v12 = vadd.f32 %v846_v3, %v3646_v29  ;;  %v3688_v15 = vadd.f32 %v850_v4, %v3644_v47  ;;  %v849_v35 = vmul.f32 %v3554_v37, %v3623_v10 }
  0x97   :  { %v3004_v16 = vpop.eup %3003  ;;  %3019 = vtanh.f32 %v196_v52  ;;  %v3693_v17 = vadd.f32 %v843_v6, %v3646_v29  ;;  %v3696_v36 = vadd.f32 %v847_v7, %v3644_v47  ;;  %v3699_v18 = vadd.f32 %v845_v8, %v3646_v29 }
  0x98   :  { %v3006_v22 = vpop.eup %3005  ;;  %v2797_v23 = vpack.c.bf16 %v3004_v16, %v2996_v56  ;;  %3021 = vtanh.f32 %v200_v53  ;;  %v3702_v26 = vadd.f32 %v849_v35, %v3644_v47  ;;  %v1468_v37 = vmul.f32 %v3556_v38, %v3565_v42 }
  0x99   :  { %v3008_v27 = vpop.eup %3007  ;;  %v2805_v28 = vpack.c.bf16 %v3006_v22, %v2998_v1  ;;  %3023 = vtanh.f32 %v198_v54  ;;  %v1472_v30 = vmul.f32 %v3556_v38, %v3598_v60  ;;  %v1470_v48 = vmul.f32 %v3558_v39, %v3565_v42 }
  0x9a   :  { %v3010_v31 = vpop.eup %3009  ;;  %2798 = vmatprep.subr.bf16.mxu0 %v2797_v23  ;;  %v2799_v49 = vpack.c.bf16 %v3008_v27, %v3000_v5  ;;  %3025 = vtanh.f32 %v202_v55  ;;  %v3711_v32 = vadd.f32 %v1468_v37, %v3563_v41  ;;  %v1474_v50 = vmul.f32 %v3558_v39, %v3598_v60 }
  0x9b   :  { %2806 = vmatprep.subr.bf16.mxu1 %v2805_v28  ;;  %v2807_v51 = vpack.c.bf16 %v3010_v31, %v3002_v9  ;;  %3027 = vtanh.f32 %v3601_v61  ;;  %v3717_v52 = vadd.f32 %v1472_v30, %v3596_v59  ;;  %v3720_v53 = vadd.f32 %v1470_v48, %v3563_v41 }
  0x9c   :  { %2800 = vmatpush1.bf16.msra.mxu0 %v2799_v49  ;;  %3029 = vtanh.f32 %v3629_v13  ;;  %v3724_v54 = vadd.f32 %v1474_v50, %v3596_v59  ;;  %v1467_v55 = vmul.f32 %v3561_v40, %v3565_v42  ;;  %v1471_v56 = vmul.f32 %v3561_v40, %v3598_v60 }
  0x9d   :  { %v3012_v1 = vpop.eup %3011  ;;  %2808 = vmatpush1.bf16.msra.mxu1 %v2807_v51  ;;  %3031 = vtanh.f32 %v3604_v62  ;;  %v1469_v61 = vmul.f32 %v3568_v43, %v3565_v42  ;;  %v1473_v13 = vmul.f32 %v3568_v43, %v3598_v60  ;;  %v1476_v3 = vmul.f32 %v3556_v38, %v3625_v11 }
  0x9e   :  { %v3014_v4 = vpop.eup %3013  ;;  %3033 = vtanh.f32 %v3632_v14  ;;  %v3739_v5 = vadd.f32 %v1467_v55, %v3563_v41  ;;  %v3742_v6 = vadd.f32 %v1471_v56, %v3596_v59  ;;  %v1480_v62 = vmul.f32 %v3556_v38, %v3623_v10  ;;  %v3796_v56 = vld [vmem:[%s4619_s3] sm:$0xff] }
  0x9f   :  { %v3016_v7 = vpop.eup %3015  ;;  %v2801_v8 = vpack.c.bf16 %v3014_v4, %v3012_v1  ;;  %3035 = vtanh.f32 %v3607_v63  ;;  %v3748_v9 = vadd.f32 %v1469_v61, %v3563_v41  ;;  %v3751_v35 = vadd.f32 %v1473_v13, %v3596_v59 }
  0xa0   :  { %v3018_v14 = vpop.eup %3017  ;;  %3037 = vtanh.f32 %v3663_v34  ;;  %v3755_v16 = vadd.f32 %v1476_v3, %v3646_v29  ;;  %v3758_v22 = vadd.f32 %v1480_v62, %v3644_v47  ;;  %v1478_v38 = vmul.f32 %v3558_v39, %v3625_v11 }
  0xa1   :  { %v3020_v23 = vpop.eup %3019  ;;  %2802 = vmatprep.subr.bf16.mxu0 %v2801_v8  ;;  %v2809_v63 = vpack.c.bf16 %v3018_v14, %v3016_v7  ;;  %3039 = vtanh.f32 %v3610_v0  ;;  %v1482_v37 = vmul.f32 %v3558_v39, %v3623_v10  ;;  %v1475_v34 = vmul.f32 %v3561_v40, %v3625_v11  ;;  %v3844_v14 = vld [vmem:[%s4619_s3 + $0x8] sm:$0xff] }
  0xa2   :  { %v3022_v27 = vpop.eup %3021  ;;  %3041 = vtanh.f32 %v3666_v57  ;;  %v3769_v28 = vadd.f32 %v1478_v38, %v3646_v29  ;;  %v1479_v30 = vmul.f32 %v3561_v40, %v3623_v10  ;;  %v1477_v48 = vmul.f32 %v3568_v43, %v3625_v11 }
  0xa3   :  { %v3024_v31 = vpop.eup %3023  ;;  %2810 = vmatprep.subr.bf16.mxu1 %v2809_v63  ;;  %v2803_v0 = vpack.c.bf16 %v3022_v27, %v3020_v23  ;;  %3043 = vtanh.f32 %v3669_v58  ;;  %v3777_v39 = vadd.f32 %v1482_v37, %v3644_v47  ;;  %v3780_v49 = vadd.f32 %v1475_v34, %v3646_v29 }
  0xa4   :  { %v3026_v57 = vpop.eup %3025  ;;  %3045 = vtanh.f32 %v3672_v2  ;;  %v3784_v50 = vadd.f32 %v1479_v30, %v3644_v47  ;;  %v1481_v40 = vmul.f32 %v3568_v43, %v3623_v10  ;;  %v3789_v51 = vadd.f32 %v1477_v48, %v3646_v29 }
  0xa5   :  { %v3791_v55 = vpop.eup %3027  ;;  %2804 = vmatpush1.bf16.msra.mxu0 %v2803_v0  ;;  %v2811_v58 = vpack.c.bf16 %v3026_v57, %v3024_v31  ;;  %3047 = vtanh.f32 %v3685_v12  ;;  %v2100_v2 = vmul.f32 %v3571_v44, %v3565_v42  ;;  %v3803_v43 = vrot.slane %v3544_v33, %v3528_v25  ;;  %v3896_v57 = vld [vmem:[%s4619_s3 + $0x10] sm:$0xff] }
  0xa6   :  { %v3805_v1 = vpop.eup %3029  ;;  %3049 = vtanh.f32 %v3688_v15  ;;  %v3809_v61 = vadd.f32 %v1481_v40, %v3644_v47  ;;  %v2104_v13 = vmul.f32 %v3571_v44, %v3598_v60  ;;  %v2102_v12 = vmul.f32 %v3574_v45, %v3565_v42 }
  0xa7   :  { %v3815_v3 = vpop.eup %3031  ;;  %2812 = vmatpush1.bf16.msra.mxu1 %v2811_v58  ;;  %3051 = vtanh.f32 %v3693_v17  ;;  %v3821_v33 = vadd.f32 %v2100_v2, %v3563_v41  ;;  %v2106_v15 = vmul.f32 %v3574_v45, %v3598_v60  ;;  %v2099_v17 = vmul.f32 %v3578_v46, %v3565_v42 }
  0xa8   :  { %v3825_v4 = vpop.eup %3033  ;;  %2722 = vmatmul.mubr.msk.f32.vlgmr.msra.gmra.mrb[0].mxu0 %vm220_vm0, %v3796_v56  ;;  %3053 = vtanh.f32 %v3696_v36  ;;  %v3831_v62 = vadd.f32 %v2104_v13, %v3596_v59  ;;  %v3834_v7 = vadd.f32 %v2102_v12, %v3563_v41  ;;  %v2103_v23 = vmul.f32 %v3578_v46, %v3598_v60 }
  0xa9   :  { %v3838_v8 = vpop.eup %3035  ;;  %303 = vmatprep.mubr.f32.mxu0 %v4627_v19  ;;  %3055 = vtanh.f32 %v3699_v18  ;;  %v3850_v38 = vadd.f32 %v2106_v15, %v3596_v59  ;;  %v3860_v37 = vadd.f32 %v2099_v17, %v3563_v41  ;;  %v2101_v34 = vmul.f32 %v3803_v43, %v3565_v42 }
  0xaa   :  { %v3854_v63 = vpop.eup %3037  ;;  %2726 = vmatmul.mubr.msk.f32.vlgmr.msra.gmra.mrb[0].mxu1 %vm220_vm0, %v3796_v56  ;;  %3057 = vtanh.f32 %v3702_v26  ;;  %v2105_v18 = vmul.f32 %v3803_v43, %v3598_v60  ;;  %v3873_v26 = vadd.f32 %v2103_v23, %v3596_v59  ;;  %v2108_v48 = vmul.f32 %v3571_v44, %v3625_v11 }
  0xab   :  { %v3866_v27 = vpop.eup %3039  ;;  %392 = vmatprep.mubr.f32.mxu1 %v4627_v19  ;;  %3059 = vtanh.f32 %v3711_v32  ;;  %v3883_v42 = vadd.f32 %v2101_v34, %v3563_v41  ;;  %v2112_v32 = vmul.f32 %v3571_v44, %v3623_v10  ;;  %v2110_v44 = vmul.f32 %v3574_v45, %v3625_v11 }
  0xac   :  { %v3877_v31 = vpop.eup %3041  ;;  %2723 = vmatmul.mubr.msk.f32.gmra.mrb[2].mxu0 %vm220_vm0, %v3844_v14  ;;  %3061 = vtanh.f32 %v3717_v52  ;;  %v3886_v60 = vadd.f32 %v2105_v18, %v3596_v59  ;;  %v3902_v41 = vadd.f32 %v2108_v48, %v3646_v29  ;;  %v2114_v58 = vmul.f32 %v3574_v45, %v3623_v10 }
  0xad   :  { %v3890_v0 = vpop.eup %3043  ;;  %309 = vmatprep.mubr.f32.mxu0 %v4627_v19  ;;  %3063 = vtanh.f32 %v3720_v53  ;;  %v3912_v40 = vadd.f32 %v2112_v32, %v3644_v47  ;;  %v2107_v53 = vmul.f32 %v3578_v46, %v3625_v11  ;;  %v2111_v12 = vmul.f32 %v3578_v46, %v3623_v10  ;;  %v3948_v46 = vld [vmem:[%s4619_s3 + $0x18] sm:$0xff] }
  0xae   :  { %v3906_v59 = vpop.eup %3045  ;;  %2727 = vmatmul.mubr.msk.f32.gmra.mrb[2].mxu1 %vm220_vm0, %v3844_v14  ;;  %3065 = vtanh.f32 %v3724_v54  ;;  %v3925_v54 = vadd.f32 %v2110_v44, %v3646_v29  ;;  %v3935_v45 = vadd.f32 %v2114_v58, %v3644_v47 }
  0xaf   :  { %v3918_v2 = vpop.eup %3047  ;;  %398 = vmatprep.mubr.f32.mxu1 %v4627_v19  ;;  %3067 = vtanh.f32 %v3739_v5  ;;  %v3938_v17 = vadd.f32 %v2107_v53, %v3646_v29  ;;  %v2109_v5 = vmul.f32 %v3803_v43, %v3625_v11  ;;  %v3954_v34 = vadd.f32 %v2111_v12, %v3644_v47 }
  0xb0   :  { %v3929_v15 = vpop.eup %3049  ;;  %2724 = vmatmul.mubr.msk.f32.gmra.mrb[4].mxu0 %vm220_vm0, %v3896_v57  ;;  %3069 = vtanh.f32 %v3742_v6  ;;  %v2113_v11 = vmul.f32 %v3803_v43, %v3623_v10 }
  0xb1   :  { %v3942_v23 = vpop.eup %3051  ;;  %315 = vmatprep.mubr.f32.mxu0 %v4627_v19  ;;  %3071 = vtanh.f32 %v3748_v9  ;;  %v3964_v48 = vadd.f32 %v2109_v5, %v3646_v29 }
  0xb2   :  { %v3958_v18 = vpop.eup %3053  ;;  %2728 = vmatmul.mubr.msk.f32.gmra.mrb[4].mxu1 %vm220_vm0, %v3896_v57  ;;  %3073 = vtanh.f32 %v3751_v35  ;;  %v2129_v10 = vadd.f32 %v2113_v11, %v3644_v47 }
  0xb3   :  { %v3966_v32 = vpop.eup %3055  ;;  %404 = vmatprep.mubr.f32.mxu1 %v4627_v19  ;;  %3075 = vtanh.f32 %v3755_v16 }
  0xb4   :  { %v3973_v43 = vpop.eup %3057  ;;  %2725 = vmatmul.mubr.msk.f32.gmra.mrb[6].mxu0 %vm220_vm0, %v3948_v46  ;;  %3077 = vtanh.f32 %v3758_v22 }
  0xb5   :  { %v3978_v29 = vpop.eup %3059  ;;  %503 = vmatprep.mubr.f32.mxu0 %v4627_v19  ;;  %3079 = vtanh.f32 %v3769_v28 }
  0xb6   :  { %v3984_v44 = vpop.eup %3061  ;;  %2729 = vmatmul.mubr.msk.f32.gmra.mrb[6].mxu1 %vm220_vm0, %v3948_v46  ;;  %3081 = vtanh.f32 %v3777_v39 }
  0xb7   :  { %v3989_v47 = vpop.eup %3063  ;;  %592 = vmatprep.mubr.f32.mxu1 %v4627_v19  ;;  %3083 = vtanh.f32 %v3780_v49 }
  0xb8   :  { %v3995_v22 = vpop.eup %3065  ;;  %3085 = vtanh.f32 %v3784_v50 }
  0xb9   :  { %v3998_v28 = vpop.eup %3067  ;;  %3087 = vtanh.f32 %v3789_v51 }
  0xba   :  { %v4003_v39 = vpop.eup %3069  ;;  %3089 = vtanh.f32 %v3809_v61 }
  0xbb   :  { %v4006_v53 = vpop.eup %3071  ;;  %3091 = vtanh.f32 %v3821_v33 }
  0xbc   :  { %4654 = vst [vmem:[#allocation6_spill] sm:$0xff] %v4006_v53  ;;  %v4011_v12 = vpop.eup %3073  ;;  %3093 = vtanh.f32 %v3831_v62 }
  0xbd   :  { %4655 = vst [vmem:[#allocation7_spill] sm:$0xff] %v4011_v12  ;;  %v4014_v50 = vpop.eup %3075  ;;  %3095 = vtanh.f32 %v3834_v7 }
  0xbe   :  { %4656 = vst [vmem:[#allocation8_spill] sm:$0xff] %v4014_v50  ;;  %v4019_v5 = vpop.eup %3077  ;;  %3097 = vtanh.f32 %v3850_v38 }
  0xbf   :  { %v4022_v61 = vpop.eup %3079  ;;  %3099 = vtanh.f32 %v3860_v37 }
  0xc0   :  { %4657 = vst [vmem:[#allocation9_spill] sm:$0xff] %v4022_v61  ;;  %v4027_v11 = vpop.eup %3081  ;;  %3101 = vtanh.f32 %v3873_v26 }
  0xc1   :  { %4658 = vst [vmem:[#allocation10_spill] sm:$0xff] %v4027_v11  ;;  %v4030_v62 = vpop.eup %3083  ;;  %3103 = vtanh.f32 %v3883_v42 }
  0xc2   :  { %4659 = vst [vmem:[#allocation11_spill] sm:$0xff] %v4030_v62  ;;  %v4035_v51 = vpop.eup %3085  ;;  %3105 = vtanh.f32 %v3886_v60 }
  0xc3   :  { %4660 = vst [vmem:[#allocation12_spill] sm:$0xff] %v4035_v51  ;;  %v4038_v38 = vpop.eup %3087  ;;  %3107 = vtanh.f32 %v3902_v41 }
  0xc4   :  { %4661 = vst [vmem:[#allocation13_spill] sm:$0xff] %v4038_v38  ;;  %v4043_v33 = vpop.eup %3089  ;;  %3109 = vtanh.f32 %v3912_v40 }
  0xc5   :  { %4662 = vst [vmem:[#allocation14_spill] sm:$0xff] %v4043_v33  ;;  %v4046_v26 = vpop.eup %3091  ;;  %3111 = vtanh.f32 %v3925_v54 }
  0xc6   :  { %4663 = vst [vmem:[#allocation15_spill] sm:$0xff] %v4046_v26  ;;  %v4051_v7 = vpop.eup %3093  ;;  %3113 = vtanh.f32 %v3935_v45 }
  0xc7   :  { %4664 = vst [vmem:[#allocation16_spill] sm:$0xff] %v4051_v7  ;;  %v4054_v60 = vpop.eup %3095  ;;  %3115 = vtanh.f32 %v3938_v17 }
  0xc8   :  { %4665 = vst [vmem:[#allocation17_spill] sm:$0xff] %v4054_v60  ;;  %v4059_v37 = vpop.eup %3097  ;;  %3117 = vtanh.f32 %v3954_v34 }
  0xc9   :  { %4666 = vst [vmem:[#allocation18_spill] sm:$0xff] %v4059_v37  ;;  %v4062_v40 = vpop.eup %3099  ;;  %3119 = vtanh.f32 %v3964_v48  ;;  %v4101_v48 = vpop.permute.xlu0 %73 }
  0xca   :  { %4667 = vst [vmem:[#allocation19_spill] sm:$0xff] %v4062_v40  ;;  %v4067_v42 = vpop.eup %3101  ;;  %3121 = vtanh.f32 %v2129_v10 }
  0xcb   :  { %4668 = vst [vmem:[#allocation20_spill] sm:$0xff] %v4067_v42  ;;  %v4069_v45 = vpop.eup %3103 }
  0xcc   :  { %4669 = vst [vmem:[#allocation21_spill] sm:$0xff] %v4069_v45  ;;  %v4073_v17 = vpop.eup %3105 }
  0xcd   :  { %4670 = vst [vmem:[#allocation22_spill] sm:$0xff] %v4073_v17  ;;  %v4075_v49 = vpop.eup %3107 }
  0xce   :  { %4671 = vst [vmem:[#allocation23_spill] sm:$0xff] %v4075_v49  ;;  %v4079_v58 = vpop.eup %3109 }
  0xcf   :  { %4672 = vst [vmem:[#allocation24_spill] sm:$0xff] %v4079_v58  ;;  %v4081_v54 = vpop.eup %3111 }
  0xd0   :  { %4673 = vst [vmem:[#allocation25_spill] sm:$0xff] %v4081_v54  ;;  %v4085_v10 = vpop.eup %3113  ;;  %v4106_v54 = vpop.permute.xlu1 %78 }
  0xd1   :  { %4674 = vst [vmem:[#allocation26_spill] sm:$0xff] %v4085_v10  ;;  %v4087_v16 = vpop.eup %3115 }
  0xd2   :  { %4675 = vst [vmem:[#allocation27_spill] sm:$0xff] %v4087_v16  ;;  %v4091_v20 = vpop.eup %3117 }
  0xd3   :  { %4676 = vst [vmem:[#allocation28_spill] sm:$0xff] %v4091_v20  ;;  %v4093_v35 = vpop.eup %3119 }
  0xd4   :  { %4677 = vst [vmem:[#allocation29_spill] sm:$0xff] %v4093_v35  ;;  %v4097_v9 = vpop.eup %3121 }
  0xd5   :  { %4678 = vst [vmem:[#allocation30_spill] sm:$0xff] %v4097_v9 }
 0x17b   :  { %v299_v52 = vpop.f32.mrb[0].mxu0 }
 0x17c   :  { %v300_v13 = vadd.f32 %v299_v52, %v4101_v48  ;;  %v301_v30 = vpop.f32.mrb[1].mxu0 }
 0x17d   :  { %v388_v36 = vpop.f32.mrb[0].mxu1  ;;  %v302_v41 = vadd.f32 %v301_v30, %v4101_v48 }
 0x17e   :  { %3123 = vtanh.f32 %v300_v13  ;;  %v389_v25 = vadd.f32 %v388_v36, %v4101_v48  ;;  %v390_v19 = vpop.f32.mrb[1].mxu1  ;;  %v4112_v36 = vpop.permute.xlu0 %83 }
 0x17f   :  { %3125 = vtanh.f32 %v302_v41  ;;  %v391_v34 = vadd.f32 %v390_v19, %v4101_v48  ;;  %v305_v16 = vpop.f32.mrb[2].mxu0 }
 0x180   :  { %3127 = vtanh.f32 %v389_v25  ;;  %v306_v6 = vadd.f32 %v305_v16, %v4106_v54  ;;  %v307_v35 = vpop.f32.mrb[3].mxu0 }
 0x181   :  { %3129 = vtanh.f32 %v391_v34  ;;  %v394_v52 = vpop.f32.mrb[2].mxu1  ;;  %v308_v9 = vadd.f32 %v307_v35, %v4106_v54 }
 0x182   :  { %3131 = vtanh.f32 %v306_v6  ;;  %v395_v30 = vadd.f32 %v394_v52, %v4106_v54  ;;  %v396_v13 = vpop.f32.mrb[3].mxu1  ;;  %v4118_v52 = vpop.permute.xlu1 %88 }
 0x183   :  { %3133 = vtanh.f32 %v308_v9  ;;  %v397_v41 = vadd.f32 %v396_v13, %v4106_v54  ;;  %v311_v20 = vpop.f32.mrb[4].mxu0 }
 0x184   :  { %3135 = vtanh.f32 %v395_v30  ;;  %v312_v19 = vadd.f32 %v311_v20, %v4112_v36  ;;  %v313_v25 = vpop.f32.mrb[5].mxu0 }
 0x185   :  { %3137 = vtanh.f32 %v397_v41  ;;  %v400_v16 = vpop.f32.mrb[4].mxu1  ;;  %v314_v34 = vadd.f32 %v313_v25, %v4112_v36 }
 0x186   :  { %3139 = vtanh.f32 %v312_v19  ;;  %v401_v6 = vadd.f32 %v400_v16, %v4112_v36  ;;  %v402_v35 = vpop.f32.mrb[5].mxu1 }
 0x187   :  { %3141 = vtanh.f32 %v314_v34  ;;  %v403_v9 = vadd.f32 %v402_v35, %v4112_v36  ;;  %v317_v10 = vpop.f32.mrb[6].mxu0 }
 0x188   :  { %v3124_v13 = vpop.eup %3123  ;;  %3143 = vtanh.f32 %v401_v6  ;;  %v318_v30 = vadd.f32 %v317_v10, %v4118_v52  ;;  %v319_v20 = vpop.f32.mrb[7].mxu0 }
 0x189   :  { %v3126_v45 = vpop.eup %3125  ;;  %3145 = vtanh.f32 %v403_v9  ;;  %v406_v41 = vpop.f32.mrb[6].mxu1  ;;  %v320_v25 = vadd.f32 %v319_v20, %v4118_v52 }
 0x18a   :  { %v3128_v19 = vpop.eup %3127  ;;  %3147 = vtanh.f32 %v318_v30  ;;  %v407_v16 = vadd.f32 %v406_v41, %v4118_v52  ;;  %v408_v17 = vpop.f32.mrb[7].mxu1 }
 0x18b   :  { %v3130_v49 = vpop.eup %3129  ;;  %3149 = vtanh.f32 %v320_v25  ;;  %v409_v34 = vadd.f32 %v408_v17, %v4118_v52 }
 0x18c   :  { %v3132_v35 = vpop.eup %3131  ;;  %3151 = vtanh.f32 %v407_v16 }
 0x18d   :  { %v3134_v6 = vpop.eup %3133  ;;  %3153 = vtanh.f32 %v409_v34  ;;  %v2815_v10 = vpack.c.bf16 %v3132_v35, %v3124_v13 }
 0x18e   :  { %v3136_v58 = vpop.eup %3135  ;;  %v2813_v40 = vpack.c.bf16 %v3134_v6, %v3126_v45 }
 0x18f   :  { %v3138_v9 = vpop.eup %3137  ;;  %v2823_v42 = vpack.c.bf16 %v3136_v58, %v3128_v19  ;;  %v4128_v58 = vld [vmem:[%s4621_s5] sm:$0xff] }
 0x190   :  { %v3140_v60 = vpop.eup %3139  ;;  %2814 = vmatprep.subr.bf16.mxu0 %v2813_v40  ;;  %v2821_v20 = vpack.c.bf16 %v3138_v9, %v3130_v49  ;;  %v4679_v49 = vmov 0.0  }
 0x191   :  { %v3142_v30 = vpop.eup %3141  ;;  %2816 = vmatpush1.bf16.msra.mxu0 %v2815_v10 }
 0x192   :  { %v3144_v41 = vpop.eup %3143  ;;  %2822 = vmatprep.subr.bf16.mxu1 %v2821_v20  ;;  %v4174_v20 = vpop.permute.xlu1 %106 }
 0x193   :  { %v3146_v37 = vpop.eup %3145  ;;  %2824 = vmatpush1.bf16.msra.mxu1 %v2823_v42  ;;  %v4136_v42 = vld [vmem:[%s4621_s5 + $0x8] sm:$0xff] }
 0x194   :  { %v3148_v25 = vpop.eup %3147 }
 0x195   :  { %v3150_v17 = vpop.eup %3149  ;;  %v2819_v26 = vpack.c.bf16 %v3148_v25, %v3140_v60 }
 0x196   :  { %v3152_v16 = vpop.eup %3151  ;;  %v2817_v7 = vpack.c.bf16 %v3150_v17, %v3142_v30 }
 0x197   :  { %v3154_v34 = vpop.eup %3153  ;;  %v2827_v13 = vpack.c.bf16 %v3152_v16, %v3144_v41 }
 0x198   :  { %2818 = vmatprep.subr.bf16.mxu0 %v2817_v7  ;;  %v2825_v45 = vpack.c.bf16 %v3154_v34, %v3146_v37  ;;  %v4147_v7 = vld [vmem:[%s4621_s5 + $0x10] sm:$0xff]  ;;  %v4158_v37 = vld [vmem:[%s4621_s5 + $0x18] sm:$0xff] }
 0x199   :  { %2820 = vmatpush1.bf16.msra.mxu0 %v2819_v26  ;;  %v4169_v26 = vpop.permute.xlu0 %101 }
 0x19a   :  { %2826 = vmatprep.subr.bf16.mxu1 %v2825_v45 }
 0x19b   :  { %2828 = vmatpush1.bf16.msra.mxu1 %v2827_v13 }
 0x19c   :  { %2730 = vmatmul.mubr.msk.f32.vlgmr.msra.gmra.mrb[8].mxu0 %vm220_vm0, %v4128_v58 }
 0x19d   :  { %509 = vmatprep.mubr.f32.mxu0 %v4679_v49 }
 0x19e   :  { %2734 = vmatmul.mubr.msk.f32.vlgmr.msra.gmra.mrb[8].mxu1 %vm220_vm0, %v4128_v58 }
 0x19f   :  { %598 = vmatprep.mubr.f32.mxu1 %v4679_v49 }
 0x1a0   :  { %2731 = vmatmul.mubr.msk.f32.gmra.mrb[10].mxu0 %vm220_vm0, %v4136_v42 }
 0x1a1   :  { %515 = vmatprep.mubr.f32.mxu0 %v4679_v49 }
 0x1a2   :  { %2735 = vmatmul.mubr.msk.f32.gmra.mrb[10].mxu1 %vm220_vm0, %v4136_v42 }
 0x1a3   :  { %604 = vmatprep.mubr.f32.mxu1 %v4679_v49 }
 0x1a4   :  { %2732 = vmatmul.mubr.msk.f32.gmra.mrb[12].mxu0 %vm220_vm0, %v4147_v7 }
 0x1a5   :  { %521 = vmatprep.mubr.f32.mxu0 %v4679_v49 }
 0x1a6   :  { %2736 = vmatmul.mubr.msk.f32.gmra.mrb[12].mxu1 %vm220_vm0, %v4147_v7 }
 0x1a7   :  { %610 = vmatprep.mubr.f32.mxu1 %v4679_v49 }
 0x1a8   :  { %2733 = vmatmul.mubr.msk.f32.gmra.mrb[14].mxu0 %vm220_vm0, %v4158_v37 }
 0x1a9   :  { %700 = vmatprep.mubr.f32.mxu0 %v4679_v49 }
 0x1aa   :  { %2737 = vmatmul.mubr.msk.f32.gmra.mrb[14].mxu1 %vm220_vm0, %v4158_v37 }
 0x1ab   :  { %771 = vmatprep.mubr.f32.mxu1 %v4679_v49 }
 0x26f   :  { %v505_v60 = vpop.f32.mrb[8].mxu0 }
 0x270   :  { %v506_v40 = vadd.f32 %v505_v60, %v4169_v26  ;;  %v507_v19 = vpop.f32.mrb[9].mxu0  ;;  %v4180_v60 = vpop.permute.xlu0 %111 }
 0x271   :  { %v594_v35 = vpop.f32.mrb[8].mxu1  ;;  %v508_v6 = vadd.f32 %v507_v19, %v4169_v26 }
 0x272   :  { %3155 = vtanh.f32 %v506_v40  ;;  %v595_v10 = vadd.f32 %v594_v35, %v4169_v26  ;;  %v596_v9 = vpop.f32.mrb[9].mxu1 }
 0x273   :  { %3157 = vtanh.f32 %v508_v6  ;;  %v597_v30 = vadd.f32 %v596_v9, %v4169_v26  ;;  %v511_v41 = vpop.f32.mrb[10].mxu0 }
 0x274   :  { %3159 = vtanh.f32 %v595_v10  ;;  %v512_v25 = vadd.f32 %v511_v41, %v4174_v20  ;;  %v513_v17 = vpop.f32.mrb[11].mxu0 }
 0x275   :  { %3161 = vtanh.f32 %v597_v30  ;;  %v600_v16 = vpop.f32.mrb[10].mxu1  ;;  %v514_v34 = vadd.f32 %v513_v17, %v4174_v20 }
 0x276   :  { %3163 = vtanh.f32 %v512_v25  ;;  %v601_v13 = vadd.f32 %v600_v16, %v4174_v20  ;;  %v602_v45 = vpop.f32.mrb[11].mxu1  ;;  %v4186_v25 = vpop.permute.xlu1 %116 }
 0x277   :  { %3165 = vtanh.f32 %v514_v34  ;;  %v603_v40 = vadd.f32 %v602_v45, %v4174_v20  ;;  %v517_v19 = vpop.f32.mrb[12].mxu0 }
 0x278   :  { %3167 = vtanh.f32 %v601_v13  ;;  %v518_v35 = vadd.f32 %v517_v19, %v4180_v60  ;;  %v519_v6 = vpop.f32.mrb[13].mxu0 }
 0x279   :  { %3169 = vtanh.f32 %v603_v40  ;;  %v606_v10 = vpop.f32.mrb[12].mxu1  ;;  %v520_v9 = vadd.f32 %v519_v6, %v4180_v60 }
 0x27a   :  { %3171 = vtanh.f32 %v518_v35  ;;  %v607_v30 = vadd.f32 %v606_v10, %v4180_v60  ;;  %v608_v41 = vpop.f32.mrb[13].mxu1 }
 0x27b   :  { %3173 = vtanh.f32 %v520_v9  ;;  %v609_v17 = vadd.f32 %v608_v41, %v4180_v60  ;;  %v523_v16 = vpop.f32.mrb[14].mxu0 }
 0x27c   :  { %v3156_v34 = vpop.eup %3155  ;;  %3175 = vtanh.f32 %v607_v30  ;;  %v524_v13 = vadd.f32 %v523_v16, %v4186_v25  ;;  %v525_v45 = vpop.f32.mrb[15].mxu0 }
 0x27d   :  { %v3158_v19 = vpop.eup %3157  ;;  %3177 = vtanh.f32 %v609_v17  ;;  %v612_v40 = vpop.f32.mrb[14].mxu1  ;;  %v526_v6 = vadd.f32 %v525_v45, %v4186_v25 }
 0x27e   :  { %v3160_v35 = vpop.eup %3159  ;;  %3179 = vtanh.f32 %v524_v13  ;;  %v613_v10 = vadd.f32 %v612_v40, %v4186_v25  ;;  %v614_v38 = vpop.f32.mrb[15].mxu1 }
 0x27f   :  { %v3162_v33 = vpop.eup %3161  ;;  %3181 = vtanh.f32 %v526_v6  ;;  %v615_v9 = vadd.f32 %v614_v38, %v4186_v25 }
 0x280   :  { %v3164_v41 = vpop.eup %3163  ;;  %3183 = vtanh.f32 %v613_v10 }
 0x281   :  { %v3166_v30 = vpop.eup %3165  ;;  %3185 = vtanh.f32 %v615_v9  ;;  %v2831_v16 = vpack.c.bf16 %v3164_v41, %v3156_v34 }
 0x282   :  { %v3168_v62 = vpop.eup %3167  ;;  %v2829_v51 = vpack.c.bf16 %v3166_v30, %v3158_v19 }
 0x283   :  { %v3170_v17 = vpop.eup %3169  ;;  %v2839_v61 = vpack.c.bf16 %v3168_v62, %v3160_v35 }
 0x284   :  { %v3172_v11 = vpop.eup %3171  ;;  %2830 = vmatprep.subr.bf16.mxu0 %v2829_v51  ;;  %v2837_v45 = vpack.c.bf16 %v3170_v17, %v3162_v33  ;;  %v4196_v51 = vld [vmem:[%s4623_s7] sm:$0x1]  ;;  %v4680_v33 = vpack.c.bf16 %v3805_v1, %v3791_v55  ;;  %v4683_v55 = vpack.c.bf16 %v3906_v59, %v3890_v0  ;;  %v4684_v1 = vpack.c.bf16 %v3877_v31, %v3866_v27 }
 0x285   :  { %v3174_v13 = vpop.eup %3173  ;;  %2832 = vmatpush1.bf16.msra.mxu0 %v2831_v16 }
 0x286   :  { %v3176_v40 = vpop.eup %3175  ;;  %2838 = vmatprep.subr.bf16.mxu1 %v2837_v45  ;;  %v4688_v45 = vlaneseq }
 0x287   :  { %v3178_v53 = vpop.eup %3177  ;;  %2840 = vmatpush1.bf16.msra.mxu1 %v2839_v61  ;;  %v4681_v61 = vpack.c.bf16 %v3825_v4, %v3815_v3  ;;  %v4685_v3 = vpack.c.bf16 %v3929_v15, %v3918_v2  ;;  %v4686_v4 = vpack.c.bf16 %v3958_v18, %v3942_v23 }
 0x288   :  { %v3180_v6 = vpop.eup %3179  ;;  %vm4268_vm1 = vcmp.lt.s32.totalorder %v4688_v45, 512 }
 0x289   :  { %v3182_v38 = vpop.eup %3181  ;;  %v2835_v12 = vpack.c.bf16 %v3180_v6, %v3172_v11 }
 0x28a   :  { %v3184_v10 = vpop.eup %3183  ;;  %v2833_v50 = vpack.c.bf16 %v3182_v38, %v3174_v13 }
 0x28b   :  { %v3186_v9 = vpop.eup %3185  ;;  %v2843_v34 = vpack.c.bf16 %v3184_v10, %v3176_v40 }
 0x28c   :  { %2834 = vmatprep.subr.bf16.mxu0 %v2833_v50  ;;  %v2841_v19 = vpack.c.bf16 %v3186_v9, %v3178_v53  ;;  %v4682_v53 = vpack.c.bf16 %v3854_v63, %v3838_v8  ;;  %v4687_v8 = vpack.c.bf16 %v3973_v43, %v3966_v32  ;;  %v124_v63 = vpop.permute.xlu0 %123 }
 0x28d   :  { %2836 = vmatpush1.bf16.msra.mxu0 %v2835_v12  ;;  %v4253_v31 = vrot.slane %v124_v63, %v3525_v24 }
 0x28e   :  { %2842 = vmatprep.subr.bf16.mxu1 %v2841_v19  ;;  %2846 = vmatprep.subr.bf16.mxu0 %v4680_v33 }
 0x28f   :  { %2844 = vmatpush1.bf16.msra.mxu1 %v2843_v34 }
 0x290   :  { %2854 = vmatprep.subr.bf16.mxu1 %v4681_v61  ;;  %2738 = vmatmul.mubr.msk.f32.vlgmr.msra.gmra.mrb[16].mxu0 %vm220_vm0, %v4196_v51 }
 0x291   :  { %2848 = vmatpush1.bf16.msra.mxu0 %v4682_v53  ;;  %947 = vmatprep.mubr.f32.mxu0 %v4679_v49 }
 0x292   :  { %2739 = vmatmul.mubr.msk.f32.vlgmr.msra.gmra.mrb[16].mxu1 %vm220_vm0, %v4196_v51  ;;  %2850 = vmatprep.subr.bf16.mxu0 %v4683_v55 }
 0x293   :  { %2856 = vmatpush1.bf16.msra.mxu1 %v4684_v1  ;;  %1036 = vmatprep.mubr.f32.mxu1 %v4679_v49 }
 0x294   :  { %2858 = vmatprep.subr.bf16.mxu1 %v4685_v3 }
 0x295   :  { %2852 = vmatpush1.bf16.msra.mxu0 %v4686_v4 }
 0x297   :  { %2860 = vmatpush1.bf16.msra.mxu1 %v4687_v8 }
 0x298   :  { %2741 = vmatmul.mubr.msk.f32.vlgmr.msra.gmra.mrb[18].mxu0 %vm220_vm0, %v3796_v56 }
 0x299   :  { %953 = vmatprep.mubr.f32.mxu0 %v4679_v49 }
 0x29a   :  { %2745 = vmatmul.mubr.msk.f32.vlgmr.msra.gmra.mrb[18].mxu1 %vm220_vm0, %v3796_v56  ;;  %v3414_v56 = vmov 1966171168  }
 0x29b   :  { %1042 = vmatprep.mubr.f32.mxu1 %v4679_v49 }
 0x29c   :  { %2742 = vmatmul.mubr.msk.f32.gmra.mrb[20].mxu0 %vm220_vm0, %v3844_v14 }
 0x29d   :  { %959 = vmatprep.mubr.f32.mxu0 %v4679_v49 }
 0x29e   :  { %2746 = vmatmul.mubr.msk.f32.gmra.mrb[20].mxu1 %vm220_vm0, %v3844_v14  ;;  %v785_v14 = vunpack.c.l.s4 %v3414_v56 }
 0x29f   :  { %1048 = vmatprep.mubr.f32.mxu1 %v4679_v49 }
 0x2a0   :  { %2743 = vmatmul.mubr.msk.f32.gmra.mrb[22].mxu0 %vm220_vm0, %v3896_v57  ;;  %v786_v27 = vunpack.c.0.s8 %v785_v14 }
 0x2a1   :  { %965 = vmatprep.mubr.f32.mxu0 %v4679_v49 }
 0x2a2   :  { %2747 = vmatmul.mubr.msk.f32.gmra.mrb[22].mxu1 %vm220_vm0, %v3896_v57  ;;  %v4257_v2 = vsub.s32 %v786_v27, %v3520_v21 }
 0x2a3   :  { %1054 = vmatprep.mubr.f32.mxu1 %v4679_v49 }
 0x2a4   :  { %2744 = vmatmul.mubr.msk.f32.gmra.mrb[24].mxu0 %vm220_vm0, %v3948_v46 }
 0x2a5   :  { %1141 = vmatprep.mubr.f32.mxu0 %v4679_v49 }
 0x2a6   :  { %2748 = vmatmul.mubr.msk.f32.gmra.mrb[24].mxu1 %vm220_vm0, %v3948_v46 }
 0x2a7   :  { %1230 = vmatprep.mubr.f32.mxu1 %v4679_v49 }
 0x363   :  { %v702_v0 = vpop.f32.mrb[16].mxu0 }
 0x364   :  { %v703_v57 = vadd.f32 %v702_v0, %v4253_v31  ;;  %v704_v59 = vpop.f32.mrb[17].mxu0 }
 0x365   :  { %v773_v15 = vpop.f32.mrb[16].mxu1  ;;  %v705_v23 = vadd.f32 %v704_v59, %v4253_v31 }
 0x366   :  { %v774_v46 = vadd.f32 %v773_v15, %v4253_v31  ;;  %v775_v18 = vpop.f32.mrb[17].mxu1 }
 0x367   :  { %v782_v32 = vcombine.low %v703_v57, %v705_v23  ;;  %v776_v43 = vadd.f32 %v775_v18, %v4253_v31 }
 0x369   :  { %v790_v12 = vrot.slane %v782_v32, %v4257_v2  ;;  %v783_v24 = vcombine.low %v774_v46, %v776_v43 }
 0x36b   :  { %v797_v50 = vrot.slane %v783_v24, %v4257_v2  ;;  %v949_v11 = vpop.f32.mrb[18].mxu0 }
 0x36c   :  { %v950_v62 = vadd.f32 %v949_v11, %v4101_v48  ;;  %v951_v35 = vpop.f32.mrb[19].mxu0 }
 0x36d   :  { %v798_v21 = vcombine.low %v790_v12, %v797_v50  ;;  %v1038_v41 = vpop.f32.mrb[18].mxu1  ;;  %v952_v30 = vadd.f32 %v951_v35, %v4101_v48 }
 0x36e   :  { %3187 = vtanh.f32 %v950_v62  ;;  %v1039_v16 = vadd.f32 %v1038_v41, %v4101_v48  ;;  %v1040_v17 = vpop.f32.mrb[19].mxu1 }
 0x36f   :  { %v805_v40 = vrot.slane %v798_v21, %v4257_v2  ;;  %3189 = vtanh.f32 %v952_v30  ;;  %v1041_v6 = vadd.f32 %v1040_v17, %v4101_v48  ;;  %v955_v38 = vpop.f32.mrb[20].mxu0 }
 0x370   :  { %3191 = vtanh.f32 %v1039_v16  ;;  %v956_v10 = vadd.f32 %v955_v38, %v4106_v54  ;;  %v957_v9 = vpop.f32.mrb[21].mxu0 }
 0x371   :  { %3193 = vtanh.f32 %v1041_v6  ;;  %v1044_v34 = vpop.f32.mrb[20].mxu1  ;;  %v958_v19 = vadd.f32 %v957_v9, %v4106_v54  ;;  %811 = vst.msk [vmem:[#allocation3] sm:$0xf] %vm4268_vm1, %v805_v40 }
 0x372   :  { %3195 = vtanh.f32 %v956_v10  ;;  %v1045_v33 = vadd.f32 %v1044_v34, %v4106_v54  ;;  %v1046_v61 = vpop.f32.mrb[21].mxu1 }
 0x373   :  { %3197 = vtanh.f32 %v958_v19  ;;  %v1047_v53 = vadd.f32 %v1046_v61, %v4106_v54  ;;  %v961_v55 = vpop.f32.mrb[22].mxu0 }
 0x374   :  { %3199 = vtanh.f32 %v1045_v33  ;;  %v962_v1 = vadd.f32 %v961_v55, %v4112_v36  ;;  %v963_v3 = vpop.f32.mrb[23].mxu0 }
 0x375   :  { %3201 = vtanh.f32 %v1047_v53  ;;  %v1050_v4 = vpop.f32.mrb[22].mxu1  ;;  %v964_v8 = vadd.f32 %v963_v3, %v4112_v36 }
 0x376   :  { %3203 = vtanh.f32 %v962_v1  ;;  %v1051_v56 = vadd.f32 %v1050_v4, %v4112_v36  ;;  %v1052_v14 = vpop.f32.mrb[23].mxu1 }
 0x377   :  { %3205 = vtanh.f32 %v964_v8  ;;  %v1053_v63 = vadd.f32 %v1052_v14, %v4112_v36  ;;  %v967_v27 = vpop.f32.mrb[24].mxu0 }
 0x378   :  { %v3188_v0 = vpop.eup %3187  ;;  %3207 = vtanh.f32 %v1051_v56  ;;  %v968_v57 = vadd.f32 %v967_v27, %v4118_v52  ;;  %v969_v59 = vpop.f32.mrb[25].mxu0 }
 0x379   :  { %v3190_v15 = vpop.eup %3189  ;;  %3209 = vtanh.f32 %v1053_v63  ;;  %v1056_v23 = vpop.f32.mrb[24].mxu1  ;;  %v970_v46 = vadd.f32 %v969_v59, %v4118_v52 }
 0x37a   :  { %v3192_v18 = vpop.eup %3191  ;;  %3211 = vtanh.f32 %v968_v57  ;;  %v1057_v32 = vadd.f32 %v1056_v23, %v4118_v52  ;;  %v1058_v43 = vpop.f32.mrb[25].mxu1 }
 0x37b   :  { %v3194_v12 = vpop.eup %3193  ;;  %3213 = vtanh.f32 %v970_v46  ;;  %v1059_v24 = vadd.f32 %v1058_v43, %v4118_v52 }
 0x37c   :  { %v3196_v50 = vpop.eup %3195  ;;  %3215 = vtanh.f32 %v1057_v32 }
 0x37d   :  { %v3198_v11 = vpop.eup %3197  ;;  %3217 = vtanh.f32 %v1059_v24  ;;  %v2863_v62 = vpack.c.bf16 %v3196_v50, %v3188_v0 }
 0x37e   :  { %v3200_v35 = vpop.eup %3199  ;;  %v2861_v21 = vpack.c.bf16 %v3198_v11, %v3190_v15 }
 0x37f   :  { %v3202_v41 = vpop.eup %3201  ;;  %v2871_v30 = vpack.c.bf16 %v3200_v35, %v3192_v18 }
 0x380   :  { %v3204_v16 = vpop.eup %3203  ;;  %2862 = vmatprep.subr.bf16.mxu0 %v2861_v21  ;;  %v2869_v17 = vpack.c.bf16 %v3202_v41, %v3194_v12 }
 0x381   :  { %v3206_v45 = vpop.eup %3205  ;;  %2864 = vmatpush1.bf16.msra.mxu0 %v2863_v62 }
 0x382   :  { %v3208_v40 = vpop.eup %3207  ;;  %2870 = vmatprep.subr.bf16.mxu1 %v2869_v17 }
 0x383   :  { %v3210_v6 = vpop.eup %3209  ;;  %2872 = vmatpush1.bf16.msra.mxu1 %v2871_v30 }
 0x384   :  { %v3212_v38 = vpop.eup %3211 }
 0x385   :  { %v3214_v10 = vpop.eup %3213  ;;  %v2867_v9 = vpack.c.bf16 %v3212_v38, %v3204_v16 }
 0x386   :  { %v3216_v34 = vpop.eup %3215  ;;  %v2865_v19 = vpack.c.bf16 %v3214_v10, %v3206_v45 }
 0x387   :  { %v3218_v33 = vpop.eup %3217  ;;  %v2875_v61 = vpack.c.bf16 %v3216_v34, %v3208_v40 }
 0x388   :  { %2866 = vmatprep.subr.bf16.mxu0 %v2865_v19  ;;  %v2873_v53 = vpack.c.bf16 %v3218_v33, %v3210_v6 }
 0x389   :  { %2868 = vmatpush1.bf16.msra.mxu0 %v2867_v9 }
 0x38a   :  { %2874 = vmatprep.subr.bf16.mxu1 %v2873_v53 }
 0x38b   :  { %2876 = vmatpush1.bf16.msra.mxu1 %v2875_v61 }
 0x38c   :  { %2749 = vmatmul.mubr.msk.f32.vlgmr.msra.gmra.mrb[26].mxu0 %vm220_vm0, %v4128_v58 }
 0x38d   :  { %1147 = vmatprep.mubr.f32.mxu0 %v4679_v49 }
 0x38e   :  { %2753 = vmatmul.mubr.msk.f32.vlgmr.msra.gmra.mrb[26].mxu1 %vm220_vm0, %v4128_v58 }
 0x38f   :  { %1236 = vmatprep.mubr.f32.mxu1 %v4679_v49 }
 0x390   :  { %2750 = vmatmul.mubr.msk.f32.gmra.mrb[28].mxu0 %vm220_vm0, %v4136_v42 }
 0x391   :  { %1153 = vmatprep.mubr.f32.mxu0 %v4679_v49 }
 0x392   :  { %2754 = vmatmul.mubr.msk.f32.gmra.mrb[28].mxu1 %vm220_vm0, %v4136_v42 }
 0x393   :  { %1242 = vmatprep.mubr.f32.mxu1 %v4679_v49 }
 0x394   :  { %2751 = vmatmul.mubr.msk.f32.gmra.mrb[30].mxu0 %vm220_vm0, %v4147_v7 }
 0x395   :  { %1159 = vmatprep.mubr.f32.mxu0 %v4679_v49 }
 0x396   :  { %2755 = vmatmul.mubr.msk.f32.gmra.mrb[30].mxu1 %vm220_vm0, %v4147_v7 }
 0x397   :  { %1248 = vmatprep.mubr.f32.mxu1 %v4679_v49 }
 0x398   :  { %2752 = vmatmul.mubr.msk.f32.gmra.mrb[32].mxu0 %vm220_vm0, %v4158_v37 }
 0x399   :  { %1335 = vmatprep.mubr.f32.mxu0 %v4679_v49 }
 0x39a   :  { %2756 = vmatmul.mubr.msk.f32.gmra.mrb[32].mxu1 %vm220_vm0, %v4158_v37 }
 0x39b   :  { %1406 = vmatprep.mubr.f32.mxu1 %v4679_v49 }
 0x45f   :  { %v1143_v55 = vpop.f32.mrb[26].mxu0 }
 0x460   :  { %v1144_v1 = vadd.f32 %v1143_v55, %v4169_v26  ;;  %v1145_v3 = vpop.f32.mrb[27].mxu0 }
 0x461   :  { %v1232_v4 = vpop.f32.mrb[26].mxu1  ;;  %v1146_v8 = vadd.f32 %v1145_v3, %v4169_v26 }
 0x462   :  { %3219 = vtanh.f32 %v1144_v1  ;;  %v1233_v56 = vadd.f32 %v1232_v4, %v4169_v26  ;;  %v1234_v14 = vpop.f32.mrb[27].mxu1 }
 0x463   :  { %3221 = vtanh.f32 %v1146_v8  ;;  %v1235_v63 = vadd.f32 %v1234_v14, %v4169_v26  ;;  %v1149_v27 = vpop.f32.mrb[28].mxu0 }
 0x464   :  { %3223 = vtanh.f32 %v1233_v56  ;;  %v1150_v0 = vadd.f32 %v1149_v27, %v4174_v20  ;;  %v1151_v57 = vpop.f32.mrb[29].mxu0 }
 0x465   :  { %3225 = vtanh.f32 %v1235_v63  ;;  %v1238_v59 = vpop.f32.mrb[28].mxu1  ;;  %v1152_v15 = vadd.f32 %v1151_v57, %v4174_v20 }
 0x466   :  { %3227 = vtanh.f32 %v1150_v0  ;;  %v1239_v23 = vadd.f32 %v1238_v59, %v4174_v20  ;;  %v1240_v46 = vpop.f32.mrb[29].mxu1 }
 0x467   :  { %3229 = vtanh.f32 %v1152_v15  ;;  %v1241_v18 = vadd.f32 %v1240_v46, %v4174_v20  ;;  %v1155_v32 = vpop.f32.mrb[30].mxu0 }
 0x468   :  { %3231 = vtanh.f32 %v1239_v23  ;;  %v1156_v43 = vadd.f32 %v1155_v32, %v4180_v60  ;;  %v1157_v12 = vpop.f32.mrb[31].mxu0  ;;  %v4691_v32 = vpack.c.bf16 %v3984_v44, %v3978_v29  ;;  %v4694_v29 = vld [vmem:[#allocation8_spill] sm:$0xff] }
 0x469   :  { %3233 = vtanh.f32 %v1241_v18  ;;  %v1244_v24 = vpop.f32.mrb[30].mxu1  ;;  %v1158_v50 = vadd.f32 %v1157_v12, %v4180_v60  ;;  %v4693_v12 = vpack.c.bf16 %v4003_v39, %v3998_v28  ;;  %v4695_v44 = vpack.c.bf16 %v4019_v5, %v4694_v29  ;;  %v4702_v28 = vld [vmem:[#allocation12_spill] sm:$0xff]  ;;  %v4703_v39 = vld [vmem:[#allocation11_spill] sm:$0xff] }
 0x46a   :  { %3235 = vtanh.f32 %v1156_v43  ;;  %v1245_v11 = vadd.f32 %v1244_v24, %v4180_v60  ;;  %v1246_v62 = vpop.f32.mrb[31].mxu1  ;;  %v4692_v43 = vpack.c.bf16 %v3995_v22, %v3989_v47  ;;  %v4696_v24 = vld [vmem:[#allocation7_spill] sm:$0xff]  ;;  %v4699_v22 = vld [vmem:[#allocation10_spill] sm:$0xff] }
 0x46b   :  { %3237 = vtanh.f32 %v1158_v50  ;;  %v1247_v35 = vadd.f32 %v1246_v62, %v4180_v60  ;;  %v1161_v21 = vpop.f32.mrb[32].mxu0  ;;  %v4697_v50 = vld [vmem:[#allocation6_spill] sm:$0xff]  ;;  %v4361_v5 = vld [vmem:[%s4619_s3] sm:$0xff] }
 0x46c   :  { %v3220_v41 = vpop.eup %3219  ;;  %3239 = vtanh.f32 %v1245_v11  ;;  %v1162_v30 = vadd.f32 %v1161_v21, %v4186_v25  ;;  %v1163_v16 = vpop.f32.mrb[33].mxu0  ;;  %v4698_v47 = vpack.c.bf16 %v4696_v24, %v4697_v50  ;;  %v4700_v11 = vld [vmem:[#allocation9_spill] sm:$0xff]  ;;  %v4705_v21 = vld [vmem:[#allocation14_spill] sm:$0xff] }
 0x46d   :  { %v3222_v17 = vpop.eup %3221  ;;  %3241 = vtanh.f32 %v1247_v35  ;;  %v1250_v45 = vpop.f32.mrb[32].mxu1  ;;  %v1164_v40 = vadd.f32 %v1163_v16, %v4186_v25  ;;  %v4701_v62 = vpack.c.bf16 %v4699_v22, %v4700_v11  ;;  %v4704_v35 = vpack.c.bf16 %v4702_v28, %v4703_v39  ;;  %v4372_v16 = vld [vmem:[%s4619_s3 + $0x8] sm:$0xff] }
 0x46e   :  { %v3224_v6 = vpop.eup %3223  ;;  %3243 = vtanh.f32 %v1162_v30  ;;  %v1251_v38 = vadd.f32 %v1250_v45, %v4186_v25  ;;  %v1252_v10 = vpop.f32.mrb[33].mxu1  ;;  %v4394_v45 = vld [vmem:[%s4619_s3 + $0x18] sm:$0xff] }
 0x46f   :  { %v3226_v9 = vpop.eup %3225  ;;  %3245 = vtanh.f32 %v1164_v40  ;;  %v1253_v34 = vadd.f32 %v1252_v10, %v4186_v25 }
 0x470   :  { %v3228_v19 = vpop.eup %3227  ;;  %3247 = vtanh.f32 %v1251_v38 }
 0x471   :  { %v3230_v33 = vpop.eup %3229  ;;  %3249 = vtanh.f32 %v1253_v34  ;;  %v2879_v61 = vpack.c.bf16 %v3228_v19, %v3220_v41  ;;  %v4706_v41 = vld [vmem:[#allocation13_spill] sm:$0xff] }
 0x472   :  { %v3232_v53 = vpop.eup %3231  ;;  %v2877_v55 = vpack.c.bf16 %v3230_v33, %v3222_v17  ;;  %v4707_v30 = vpack.c.bf16 %v4705_v21, %v4706_v41  ;;  %v4383_v17 = vld [vmem:[%s4619_s3 + $0x10] sm:$0xff] }
 0x473   :  { %v3234_v1 = vpop.eup %3233  ;;  %v2887_v3 = vpack.c.bf16 %v3232_v53, %v3224_v6 }
 0x474   :  { %v3236_v4 = vpop.eup %3235  ;;  %2878 = vmatprep.subr.bf16.mxu0 %v2877_v55  ;;  %v2885_v8 = vpack.c.bf16 %v3234_v1, %v3226_v9 }
 0x475   :  { %v3238_v56 = vpop.eup %3237  ;;  %2880 = vmatpush1.bf16.msra.mxu0 %v2879_v61 }
 0x476   :  { %v3240_v14 = vpop.eup %3239  ;;  %2886 = vmatprep.subr.bf16.mxu1 %v2885_v8 }
 0x477   :  { %v3242_v63 = vpop.eup %3241  ;;  %2888 = vmatpush1.bf16.msra.mxu1 %v2887_v3 }
 0x478   :  { %v3244_v27 = vpop.eup %3243 }
 0x479   :  { %v3246_v0 = vpop.eup %3245  ;;  %v2883_v57 = vpack.c.bf16 %v3244_v27, %v3236_v4 }
 0x47a   :  { %v3248_v59 = vpop.eup %3247  ;;  %v2881_v15 = vpack.c.bf16 %v3246_v0, %v3238_v56 }
 0x47b   :  { %v3250_v23 = vpop.eup %3249  ;;  %v2891_v46 = vpack.c.bf16 %v3248_v59, %v3240_v14 }
 0x47c   :  { %2882 = vmatprep.subr.bf16.mxu0 %v2881_v15  ;;  %v2889_v18 = vpack.c.bf16 %v3250_v23, %v3242_v63 }
 0x47d   :  { %2884 = vmatpush1.bf16.msra.mxu0 %v2883_v57 }
 0x47e   :  { %2890 = vmatprep.subr.bf16.mxu1 %v2889_v18  ;;  %2894 = vmatprep.subr.bf16.mxu0 %v4691_v32 }
 0x47f   :  { %2892 = vmatpush1.bf16.msra.mxu1 %v2891_v46 }
 0x480   :  { %2902 = vmatprep.subr.bf16.mxu1 %v4692_v43  ;;  %2757 = vmatmul.mubr.msk.f32.vlgmr.msra.gmra.mrb[34].mxu0 %vm220_vm0, %v4196_v51 }
 0x481   :  { %2896 = vmatpush1.bf16.msra.mxu0 %v4693_v12  ;;  %1579 = vmatprep.mubr.f32.mxu0 %v4679_v49 }
 0x482   :  { %2758 = vmatmul.mubr.msk.f32.vlgmr.msra.gmra.mrb[34].mxu1 %vm220_vm0, %v4196_v51  ;;  %2898 = vmatprep.subr.bf16.mxu0 %v4695_v44 }
 0x483   :  { %2904 = vmatpush1.bf16.msra.mxu1 %v4698_v47  ;;  %1668 = vmatprep.mubr.f32.mxu1 %v4679_v49 }
 0x484   :  { %2906 = vmatprep.subr.bf16.mxu1 %v4701_v62 }
 0x485   :  { %2900 = vmatpush1.bf16.msra.mxu0 %v4704_v35 }
 0x487   :  { %2908 = vmatpush1.bf16.msra.mxu1 %v4707_v30 }
 0x488   :  { %2760 = vmatmul.mubr.msk.f32.vlgmr.msra.gmra.mrb[36].mxu0 %vm220_vm0, %v4361_v5 }
 0x489   :  { %1585 = vmatprep.mubr.f32.mxu0 %v4679_v49 }
 0x48a   :  { %2764 = vmatmul.mubr.msk.f32.vlgmr.msra.gmra.mrb[36].mxu1 %vm220_vm0, %v4361_v5 }
 0x48b   :  { %1674 = vmatprep.mubr.f32.mxu1 %v4679_v49 }
 0x48c   :  { %2761 = vmatmul.mubr.msk.f32.gmra.mrb[38].mxu0 %vm220_vm0, %v4372_v16 }
 0x48d   :  { %1591 = vmatprep.mubr.f32.mxu0 %v4679_v49 }
 0x48e   :  { %2765 = vmatmul.mubr.msk.f32.gmra.mrb[38].mxu1 %vm220_vm0, %v4372_v16 }
 0x48f   :  { %1680 = vmatprep.mubr.f32.mxu1 %v4679_v49 }
 0x490   :  { %2762 = vmatmul.mubr.msk.f32.gmra.mrb[40].mxu0 %vm220_vm0, %v4383_v17 }
 0x491   :  { %1597 = vmatprep.mubr.f32.mxu0 %v4679_v49 }
 0x492   :  { %2766 = vmatmul.mubr.msk.f32.gmra.mrb[40].mxu1 %vm220_vm0, %v4383_v17 }
 0x493   :  { %1686 = vmatprep.mubr.f32.mxu1 %v4679_v49 }
 0x494   :  { %2763 = vmatmul.mubr.msk.f32.gmra.mrb[42].mxu0 %vm220_vm0, %v4394_v45 }
 0x495   :  { %1773 = vmatprep.mubr.f32.mxu0 %v4679_v49 }
 0x496   :  { %2767 = vmatmul.mubr.msk.f32.gmra.mrb[42].mxu1 %vm220_vm0, %v4394_v45 }
 0x497   :  { %1862 = vmatprep.mubr.f32.mxu1 %v4679_v49 }
 0x553   :  { %v1337_v40 = vpop.f32.mrb[34].mxu0 }
 0x554   :  { %v1338_v6 = vadd.f32 %v1337_v40, %v4253_v31  ;;  %v1339_v38 = vpop.f32.mrb[35].mxu0 }
 0x555   :  { %v1408_v10 = vpop.f32.mrb[34].mxu1  ;;  %v1340_v9 = vadd.f32 %v1339_v38, %v4253_v31 }
 0x556   :  { %v1409_v34 = vadd.f32 %v1408_v10, %v4253_v31  ;;  %v1410_v19 = vpop.f32.mrb[35].mxu1 }
 0x557   :  { %v1417_v33 = vcombine.low %v1338_v6, %v1340_v9  ;;  %v1411_v61 = vadd.f32 %v1410_v19, %v4253_v31 }
 0x559   :  { %v1425_v53 = vrot.slane %v1417_v33, %v4257_v2  ;;  %v1418_v55 = vcombine.low %v1409_v34, %v1411_v61 }
 0x55b   :  { %v1432_v1 = vrot.slane %v1418_v55, %v4257_v2  ;;  %v1581_v3 = vpop.f32.mrb[36].mxu0 }
 0x55c   :  { %v1582_v4 = vadd.f32 %v1581_v3, %v4101_v48  ;;  %v1583_v8 = vpop.f32.mrb[37].mxu0 }
 0x55d   :  { %v1433_v56 = vcombine.low %v1425_v53, %v1432_v1  ;;  %v1670_v14 = vpop.f32.mrb[36].mxu1  ;;  %v1584_v63 = vadd.f32 %v1583_v8, %v4101_v48 }
 0x55e   :  { %3251 = vtanh.f32 %v1582_v4  ;;  %v1671_v27 = vadd.f32 %v1670_v14, %v4101_v48  ;;  %v1672_v0 = vpop.f32.mrb[37].mxu1 }
 0x55f   :  { %v1440_v57 = vrot.slane %v1433_v56, %v4257_v2  ;;  %3253 = vtanh.f32 %v1584_v63  ;;  %v1673_v59 = vadd.f32 %v1672_v0, %v4101_v48  ;;  %v1587_v15 = vpop.f32.mrb[38].mxu0 }
 0x560   :  { %3255 = vtanh.f32 %v1671_v27  ;;  %v1588_v23 = vadd.f32 %v1587_v15, %v4106_v54  ;;  %v1589_v46 = vpop.f32.mrb[39].mxu0 }
 0x561   :  { %3257 = vtanh.f32 %v1673_v59  ;;  %v1676_v18 = vpop.f32.mrb[38].mxu1  ;;  %v1590_v32 = vadd.f32 %v1589_v46, %v4106_v54  ;;  %1443 = vst.msk [vmem:[#allocation3 + $0x4] sm:$0xf] %vm4268_vm1, %v1440_v57 }
 0x562   :  { %3259 = vtanh.f32 %v1588_v23  ;;  %v1677_v43 = vadd.f32 %v1676_v18, %v4106_v54  ;;  %v1678_v12 = vpop.f32.mrb[39].mxu1 }
 0x563   :  { %3261 = vtanh.f32 %v1590_v32  ;;  %v1679_v29 = vadd.f32 %v1678_v12, %v4106_v54  ;;  %v1593_v44 = vpop.f32.mrb[40].mxu0 }
 0x564   :  { %3263 = vtanh.f32 %v1677_v43  ;;  %v1594_v24 = vadd.f32 %v1593_v44, %v4112_v36  ;;  %v1595_v50 = vpop.f32.mrb[41].mxu0 }
 0x565   :  { %3265 = vtanh.f32 %v1679_v29  ;;  %v1682_v47 = vpop.f32.mrb[40].mxu1  ;;  %v1596_v22 = vadd.f32 %v1595_v50, %v4112_v36 }
 0x566   :  { %3267 = vtanh.f32 %v1594_v24  ;;  %v1683_v11 = vadd.f32 %v1682_v47, %v4112_v36  ;;  %v1684_v62 = vpop.f32.mrb[41].mxu1 }
 0x567   :  { %3269 = vtanh.f32 %v1596_v22  ;;  %v1685_v28 = vadd.f32 %v1684_v62, %v4112_v36  ;;  %v1599_v39 = vpop.f32.mrb[42].mxu0 }
 0x568   :  { %v3252_v35 = vpop.eup %3251  ;;  %3271 = vtanh.f32 %v1683_v11  ;;  %v1600_v21 = vadd.f32 %v1599_v39, %v4118_v52  ;;  %v1601_v41 = vpop.f32.mrb[43].mxu0 }
 0x569   :  { %v3254_v30 = vpop.eup %3253  ;;  %3273 = vtanh.f32 %v1685_v28  ;;  %v1688_v40 = vpop.f32.mrb[42].mxu1  ;;  %v1602_v6 = vadd.f32 %v1601_v41, %v4118_v52 }
 0x56a   :  { %v3256_v38 = vpop.eup %3255  ;;  %3275 = vtanh.f32 %v1600_v21  ;;  %v1689_v10 = vadd.f32 %v1688_v40, %v4118_v52  ;;  %v1690_v9 = vpop.f32.mrb[43].mxu1 }
 0x56b   :  { %v3258_v34 = vpop.eup %3257  ;;  %3277 = vtanh.f32 %v1602_v6  ;;  %v1691_v19 = vadd.f32 %v1690_v9, %v4118_v52 }
 0x56c   :  { %v3260_v33 = vpop.eup %3259  ;;  %3279 = vtanh.f32 %v1689_v10 }
 0x56d   :  { %v3262_v61 = vpop.eup %3261  ;;  %3281 = vtanh.f32 %v1691_v19  ;;  %v2911_v53 = vpack.c.bf16 %v3260_v33, %v3252_v35 }
 0x56e   :  { %v3264_v55 = vpop.eup %3263  ;;  %v2909_v1 = vpack.c.bf16 %v3262_v61, %v3254_v30 }
 0x56f   :  { %v3266_v3 = vpop.eup %3265  ;;  %v2919_v4 = vpack.c.bf16 %v3264_v55, %v3256_v38 }
 0x570   :  { %v3268_v8 = vpop.eup %3267  ;;  %2910 = vmatprep.subr.bf16.mxu0 %v2909_v1  ;;  %v2917_v56 = vpack.c.bf16 %v3266_v3, %v3258_v34 }
 0x571   :  { %v3270_v14 = vpop.eup %3269  ;;  %2912 = vmatpush1.bf16.msra.mxu0 %v2911_v53 }
 0x572   :  { %v3272_v63 = vpop.eup %3271  ;;  %2918 = vmatprep.subr.bf16.mxu1 %v2917_v56 }
 0x573   :  { %v3274_v27 = vpop.eup %3273  ;;  %2920 = vmatpush1.bf16.msra.mxu1 %v2919_v4 }
 0x574   :  { %v3276_v0 = vpop.eup %3275 }
 0x575   :  { %v3278_v57 = vpop.eup %3277  ;;  %v2915_v59 = vpack.c.bf16 %v3276_v0, %v3268_v8 }
 0x576   :  { %v3280_v15 = vpop.eup %3279  ;;  %v2913_v23 = vpack.c.bf16 %v3278_v57, %v3270_v14 }
 0x577   :  { %v3282_v46 = vpop.eup %3281  ;;  %v2923_v18 = vpack.c.bf16 %v3280_v15, %v3272_v63 }
 0x578   :  { %2914 = vmatprep.subr.bf16.mxu0 %v2913_v23  ;;  %v2921_v32 = vpack.c.bf16 %v3282_v46, %v3274_v27 }
 0x579   :  { %2916 = vmatpush1.bf16.msra.mxu0 %v2915_v59 }
 0x57a   :  { %2922 = vmatprep.subr.bf16.mxu1 %v2921_v32 }
 0x57b   :  { %2924 = vmatpush1.bf16.msra.mxu1 %v2923_v18 }
 0x57c   :  { %2768 = vmatmul.mubr.msk.f32.vlgmr.msra.gmra.mrb[44].mxu0 %vm220_vm0, %v4128_v58 }
 0x57d   :  { %1779 = vmatprep.mubr.f32.mxu0 %v4679_v49 }
 0x57e   :  { %2772 = vmatmul.mubr.msk.f32.vlgmr.msra.gmra.mrb[44].mxu1 %vm220_vm0, %v4128_v58 }
 0x57f   :  { %1868 = vmatprep.mubr.f32.mxu1 %v4679_v49 }
 0x580   :  { %2769 = vmatmul.mubr.msk.f32.gmra.mrb[46].mxu0 %vm220_vm0, %v4136_v42 }
 0x581   :  { %1785 = vmatprep.mubr.f32.mxu0 %v4679_v49 }
 0x582   :  { %2773 = vmatmul.mubr.msk.f32.gmra.mrb[46].mxu1 %vm220_vm0, %v4136_v42 }
 0x583   :  { %1874 = vmatprep.mubr.f32.mxu1 %v4679_v49 }
 0x584   :  { %2770 = vmatmul.mubr.msk.f32.gmra.mrb[48].mxu0 %vm220_vm0, %v4147_v7 }
 0x585   :  { %1791 = vmatprep.mubr.f32.mxu0 %v4679_v49 }
 0x586   :  { %2774 = vmatmul.mubr.msk.f32.gmra.mrb[48].mxu1 %vm220_vm0, %v4147_v7 }
 0x587   :  { %1880 = vmatprep.mubr.f32.mxu1 %v4679_v49 }
 0x588   :  { %2771 = vmatmul.mubr.msk.f32.gmra.mrb[50].mxu0 %vm220_vm0, %v4158_v37 }
 0x589   :  { %1967 = vmatprep.mubr.f32.mxu0 %v4679_v49 }
 0x58a   :  { %2775 = vmatmul.mubr.msk.f32.gmra.mrb[50].mxu1 %vm220_vm0, %v4158_v37 }
 0x58b   :  { %2038 = vmatprep.mubr.f32.mxu1 %v4679_v49 }
 0x64f   :  { %v1775_v58 = vpop.f32.mrb[44].mxu0 }
 0x650   :  { %v1776_v42 = vadd.f32 %v1775_v58, %v4169_v26  ;;  %v1777_v43 = vpop.f32.mrb[45].mxu0 }
 0x651   :  { %v1864_v12 = vpop.f32.mrb[44].mxu1  ;;  %v1778_v29 = vadd.f32 %v1777_v43, %v4169_v26 }
 0x652   :  { %3283 = vtanh.f32 %v1776_v42  ;;  %v1865_v7 = vadd.f32 %v1864_v12, %v4169_v26  ;;  %v1866_v44 = vpop.f32.mrb[45].mxu1 }
 0x653   :  { %3285 = vtanh.f32 %v1778_v29  ;;  %v1867_v24 = vadd.f32 %v1866_v44, %v4169_v26  ;;  %v1781_v50 = vpop.f32.mrb[46].mxu0 }
 0x654   :  { %3287 = vtanh.f32 %v1865_v7  ;;  %v1782_v37 = vadd.f32 %v1781_v50, %v4174_v20  ;;  %v1783_v47 = vpop.f32.mrb[47].mxu0 }
 0x655   :  { %3289 = vtanh.f32 %v1867_v24  ;;  %v1870_v22 = vpop.f32.mrb[46].mxu1  ;;  %v1784_v11 = vadd.f32 %v1783_v47, %v4174_v20  ;;  %v4709_v47 = vld [vmem:[#allocation15_spill] sm:$0xff] }
 0x656   :  { %3291 = vtanh.f32 %v1782_v37  ;;  %v1871_v62 = vadd.f32 %v1870_v22, %v4174_v20  ;;  %v1872_v28 = vpop.f32.mrb[47].mxu1  ;;  %v4708_v37 = vld [vmem:[#allocation16_spill] sm:$0xff] }
 0x657   :  { %3293 = vtanh.f32 %v1784_v11  ;;  %v1873_v39 = vadd.f32 %v1872_v28, %v4174_v20  ;;  %v1787_v35 = vpop.f32.mrb[48].mxu0  ;;  %v4710_v22 = vpack.c.bf16 %v4708_v37, %v4709_v47  ;;  %v4711_v11 = vld [vmem:[#allocation18_spill] sm:$0xff] }
 0x658   :  { %3295 = vtanh.f32 %v1871_v62  ;;  %v1788_v21 = vadd.f32 %v1787_v35, %v4180_v60  ;;  %v1789_v41 = vpop.f32.mrb[49].mxu0  ;;  %v4712_v62 = vld [vmem:[#allocation17_spill] sm:$0xff]  ;;  %v4715_v35 = vld [vmem:[#allocation19_spill] sm:$0xff] }
 0x659   :  { %3297 = vtanh.f32 %v1873_v39  ;;  %v1876_v30 = vpop.f32.mrb[48].mxu1  ;;  %v1790_v40 = vadd.f32 %v1789_v41, %v4180_v60  ;;  %v4713_v28 = vpack.c.bf16 %v4711_v11, %v4712_v62  ;;  %v4714_v39 = vld [vmem:[#allocation20_spill] sm:$0xff] }
 0x65a   :  { %3299 = vtanh.f32 %v1788_v21  ;;  %v1877_v6 = vadd.f32 %v1876_v30, %v4180_v60  ;;  %v1878_v38 = vpop.f32.mrb[49].mxu1  ;;  %v4716_v21 = vpack.c.bf16 %v4714_v39, %v4715_v35  ;;  %v4717_v41 = vld [vmem:[#allocation24_spill] sm:$0xff]  ;;  %v4718_v30 = vld [vmem:[#allocation23_spill] sm:$0xff] }
 0x65b   :  { %3301 = vtanh.f32 %v1790_v40  ;;  %v1879_v10 = vadd.f32 %v1878_v38, %v4180_v60  ;;  %v1793_v9 = vpop.f32.mrb[50].mxu0  ;;  %v4719_v40 = vpack.c.bf16 %v4717_v41, %v4718_v30  ;;  %v4721_v38 = vld [vmem:[#allocation21_spill] sm:$0xff] }
 0x65c   :  { %v3284_v34 = vpop.eup %3283  ;;  %3303 = vtanh.f32 %v1877_v6  ;;  %v1794_v19 = vadd.f32 %v1793_v9, %v4186_v25  ;;  %v1795_v33 = vpop.f32.mrb[51].mxu0  ;;  %v4720_v6 = vld [vmem:[#allocation22_spill] sm:$0xff] }
 0x65d   :  { %v3286_v61 = vpop.eup %3285  ;;  %3305 = vtanh.f32 %v1879_v10  ;;  %v1882_v53 = vpop.f32.mrb[50].mxu1  ;;  %v1796_v55 = vadd.f32 %v1795_v33, %v4186_v25  ;;  %v4722_v10 = vpack.c.bf16 %v4720_v6, %v4721_v38  ;;  %v4723_v9 = vld [vmem:[#allocation26_spill] sm:$0xff]  ;;  %v4726_v33 = vld [vmem:[#allocation28_spill] sm:$0xff] }
 0x65e   :  { %v3288_v1 = vpop.eup %3287  ;;  %3307 = vtanh.f32 %v1794_v19  ;;  %v1883_v3 = vadd.f32 %v1882_v53, %v4186_v25  ;;  %v1884_v4 = vpop.f32.mrb[51].mxu1 }
 0x65f   :  { %v3290_v8 = vpop.eup %3289  ;;  %3309 = vtanh.f32 %v1796_v55  ;;  %v1885_v56 = vadd.f32 %v1884_v4, %v4186_v25  ;;  %v4729_v55 = vld [vmem:[#allocation30_spill] sm:$0xff] }
 0x660   :  { %v3292_v14 = vpop.eup %3291  ;;  %3311 = vtanh.f32 %v1883_v3 }
 0x661   :  { %v3294_v63 = vpop.eup %3293  ;;  %3313 = vtanh.f32 %v1885_v56  ;;  %v2927_v27 = vpack.c.bf16 %v3292_v14, %v3284_v34  ;;  %v4724_v34 = vld [vmem:[#allocation25_spill] sm:$0xff] }
 0x662   :  { %v3296_v0 = vpop.eup %3295  ;;  %v2925_v57 = vpack.c.bf16 %v3294_v63, %v3286_v61  ;;  %v4725_v19 = vpack.c.bf16 %v4723_v9, %v4724_v34  ;;  %v4727_v61 = vld [vmem:[#allocation27_spill] sm:$0xff] }
 0x663   :  { %v3298_v59 = vpop.eup %3297  ;;  %v2935_v15 = vpack.c.bf16 %v3296_v0, %v3288_v1  ;;  %v4728_v53 = vpack.c.bf16 %v4726_v33, %v4727_v61 }
 0x664   :  { %v3300_v23 = vpop.eup %3299  ;;  %2926 = vmatprep.subr.bf16.mxu0 %v2925_v57  ;;  %v2933_v46 = vpack.c.bf16 %v3298_v59, %v3290_v8 }
 0x665   :  { %v3302_v18 = vpop.eup %3301  ;;  %2928 = vmatpush1.bf16.msra.mxu0 %v2927_v27 }
 0x666   :  { %v3304_v32 = vpop.eup %3303  ;;  %2934 = vmatprep.subr.bf16.mxu1 %v2933_v46 }
 0x667   :  { %v3306_v58 = vpop.eup %3305  ;;  %2936 = vmatpush1.bf16.msra.mxu1 %v2935_v15 }
 0x668   :  { %v3308_v42 = vpop.eup %3307 }
 0x669   :  { %v3310_v43 = vpop.eup %3309  ;;  %v2931_v12 = vpack.c.bf16 %v3308_v42, %v3300_v23 }
 0x66a   :  { %v3312_v29 = vpop.eup %3311  ;;  %v2929_v7 = vpack.c.bf16 %v3310_v43, %v3302_v18 }
 0x66b   :  { %v3314_v44 = vpop.eup %3313  ;;  %v2939_v24 = vpack.c.bf16 %v3312_v29, %v3304_v32 }
 0x66c   :  { %2930 = vmatprep.subr.bf16.mxu0 %v2929_v7  ;;  %v2937_v50 = vpack.c.bf16 %v3314_v44, %v3306_v58 }
 0x66d   :  { %2932 = vmatpush1.bf16.msra.mxu0 %v2931_v12 }
 0x66e   :  { %2938 = vmatprep.subr.bf16.mxu1 %v2937_v50  ;;  %2942 = vmatprep.subr.bf16.mxu0 %v4710_v22 }
 0x66f   :  { %2940 = vmatpush1.bf16.msra.mxu1 %v2939_v24 }
 0x670   :  { %2950 = vmatprep.subr.bf16.mxu1 %v4713_v28  ;;  %2776 = vmatmul.mubr.msk.f32.vlgmr.msra.gmra.mrb[52].mxu0 %vm220_vm0, %v4196_v51 }
 0x671   :  { %2944 = vmatpush1.bf16.msra.mxu0 %v4716_v21  ;;  %2211 = vmatprep.mubr.f32.mxu0 %v4679_v49 }
 0x672   :  { %2777 = vmatmul.mubr.msk.f32.vlgmr.msra.gmra.mrb[52].mxu1 %vm220_vm0, %v4196_v51  ;;  %2946 = vmatprep.subr.bf16.mxu0 %v4719_v40  ;;  %v4730_v51 = vld [vmem:[#allocation29_spill] sm:$0xff] }
 0x673   :  { %2952 = vmatpush1.bf16.msra.mxu1 %v4722_v10  ;;  %2300 = vmatprep.mubr.f32.mxu1 %v4679_v49  ;;  %v4731_v1 = vpack.c.bf16 %v4729_v55, %v4730_v51 }
 0x674   :  { %2954 = vmatprep.subr.bf16.mxu1 %v4725_v19 }
 0x675   :  { %2948 = vmatpush1.bf16.msra.mxu0 %v4728_v53 }
 0x677   :  { %2956 = vmatpush1.bf16.msra.mxu1 %v4731_v1 }
 0x678   :  { %2779 = vmatmul.mubr.msk.f32.vlgmr.msra.gmra.mrb[54].mxu0 %vm220_vm0, %v4361_v5 }
 0x679   :  { %2217 = vmatprep.mubr.f32.mxu0 %v4679_v49 }
 0x67a   :  { %2783 = vmatmul.mubr.msk.f32.vlgmr.msra.gmra.mrb[54].mxu1 %vm220_vm0, %v4361_v5 }
 0x67b   :  { %2306 = vmatprep.mubr.f32.mxu1 %v4679_v49 }
 0x67c   :  { %2780 = vmatmul.mubr.msk.f32.gmra.mrb[56].mxu0 %vm220_vm0, %v4372_v16 }
 0x67d   :  { %2223 = vmatprep.mubr.f32.mxu0 %v4679_v49 }
 0x67e   :  { %2784 = vmatmul.mubr.msk.f32.gmra.mrb[56].mxu1 %vm220_vm0, %v4372_v16 }
 0x67f   :  { %2312 = vmatprep.mubr.f32.mxu1 %v4679_v49 }
 0x680   :  { %2781 = vmatmul.mubr.msk.f32.gmra.mrb[58].mxu0 %vm220_vm0, %v4383_v17 }
 0x681   :  { %2229 = vmatprep.mubr.f32.mxu0 %v4679_v49 }
 0x682   :  { %2785 = vmatmul.mubr.msk.f32.gmra.mrb[58].mxu1 %vm220_vm0, %v4383_v17 }
 0x683   :  { %2318 = vmatprep.mubr.f32.mxu1 %v4679_v49 }
 0x684   :  { %2782 = vmatmul.mubr.msk.f32.gmra.mrb[60].mxu0 %vm220_vm0, %v4394_v45 }
 0x685   :  { %2405 = vmatprep.mubr.f32.mxu0 %v4679_v49 }
 0x686   :  { %2786 = vmatmul.mubr.msk.f32.gmra.mrb[60].mxu1 %vm220_vm0, %v4394_v45 }
 0x687   :  { %2494 = vmatprep.mubr.f32.mxu1 %v4679_v49 }
 0x743   :  { %v1969_v5 = vpop.f32.mrb[52].mxu0 }
 0x744   :  { %v1970_v16 = vadd.f32 %v1969_v5, %v4253_v31  ;;  %v1971_v3 = vpop.f32.mrb[53].mxu0 }
 0x745   :  { %v2040_v4 = vpop.f32.mrb[52].mxu1  ;;  %v1972_v8 = vadd.f32 %v1971_v3, %v4253_v31 }
 0x746   :  { %v2041_v17 = vadd.f32 %v2040_v4, %v4253_v31  ;;  %v2042_v56 = vpop.f32.mrb[53].mxu1 }
 0x747   :  { %v2049_v14 = vcombine.low %v1970_v16, %v1972_v8  ;;  %v2043_v63 = vadd.f32 %v2042_v56, %v4253_v31 }
 0x749   :  { %v2057_v27 = vrot.slane %v2049_v14, %v4257_v2  ;;  %v2050_v0 = vcombine.low %v2041_v17, %v2043_v63 }
 0x74b   :  { %v2064_v45 = vrot.slane %v2050_v0, %v4257_v2  ;;  %v2213_v57 = vpop.f32.mrb[54].mxu0 }
 0x74c   :  { %v2214_v59 = vadd.f32 %v2213_v57, %v4101_v48  ;;  %v2215_v15 = vpop.f32.mrb[55].mxu0 }
 0x74d   :  { %v2065_v23 = vcombine.low %v2057_v27, %v2064_v45  ;;  %v2302_v46 = vpop.f32.mrb[54].mxu1  ;;  %v2216_v18 = vadd.f32 %v2215_v15, %v4101_v48  ;;  %v3383_v15 = vld [vmem:[%s4621_s5] sm:$0xff] }
 0x74e   :  { %3315 = vtanh.f32 %v2214_v59  ;;  %v2303_v32 = vadd.f32 %v2302_v46, %v4101_v48  ;;  %v2304_v58 = vpop.f32.mrb[55].mxu1  ;;  %v3385_v46 = vld [vmem:[%s4621_s5 + $0x10] sm:$0xff] }
 0x74f   :  { %v2072_v42 = vrot.slane %v2065_v23, %v4257_v2  ;;  %3317 = vtanh.f32 %v2216_v18  ;;  %v2305_v43 = vadd.f32 %v2304_v58, %v4101_v48  ;;  %v2219_v12 = vpop.f32.mrb[56].mxu0  ;;  %v3384_v23 = vld [vmem:[%s4621_s5 + $0x8] sm:$0xff]  ;;  %v3386_v18 = vld [vmem:[%s4621_s5 + $0x18] sm:$0xff] }
 0x750   :  { %3319 = vtanh.f32 %v2303_v32  ;;  %v2220_v29 = vadd.f32 %v2219_v12, %v4106_v54  ;;  %v2221_v7 = vpop.f32.mrb[57].mxu0 }
 0x751   :  { %3321 = vtanh.f32 %v2305_v43  ;;  %v2308_v44 = vpop.f32.mrb[56].mxu1  ;;  %v2222_v24 = vadd.f32 %v2221_v7, %v4106_v54  ;;  %2075 = vst.msk [vmem:[#allocation3 + $0x8] sm:$0xf] %vm4268_vm1, %v2072_v42 }
 0x752   :  { %3323 = vtanh.f32 %v2220_v29  ;;  %v2309_v50 = vadd.f32 %v2308_v44, %v4106_v54  ;;  %v2310_v37 = vpop.f32.mrb[57].mxu1 }
 0x753   :  { %3325 = vtanh.f32 %v2222_v24  ;;  %v2311_v47 = vadd.f32 %v2310_v37, %v4106_v54  ;;  %v2225_v48 = vpop.f32.mrb[58].mxu0 }
 0x754   :  { %3327 = vtanh.f32 %v2309_v50  ;;  %v2226_v22 = vadd.f32 %v2225_v48, %v4112_v36  ;;  %v2227_v11 = vpop.f32.mrb[59].mxu0 }
 0x755   :  { %3329 = vtanh.f32 %v2311_v47  ;;  %v2314_v62 = vpop.f32.mrb[58].mxu1  ;;  %v2228_v28 = vadd.f32 %v2227_v11, %v4112_v36 }
 0x756   :  { %3331 = vtanh.f32 %v2226_v22  ;;  %v2315_v39 = vadd.f32 %v2314_v62, %v4112_v36  ;;  %v2316_v35 = vpop.f32.mrb[59].mxu1 }
 0x757   :  { %3333 = vtanh.f32 %v2228_v28  ;;  %v2317_v21 = vadd.f32 %v2316_v35, %v4112_v36  ;;  %v2231_v41 = vpop.f32.mrb[60].mxu0 }
 0x758   :  { %v3316_v30 = vpop.eup %3315  ;;  %3335 = vtanh.f32 %v2315_v39  ;;  %v2232_v54 = vadd.f32 %v2231_v41, %v4118_v52  ;;  %v2233_v40 = vpop.f32.mrb[61].mxu0 }
 0x759   :  { %v3318_v6 = vpop.eup %3317  ;;  %3337 = vtanh.f32 %v2317_v21  ;;  %v2320_v38 = vpop.f32.mrb[60].mxu1  ;;  %v2234_v10 = vadd.f32 %v2233_v40, %v4118_v52 }
 0x75a   :  { %v3320_v9 = vpop.eup %3319  ;;  %3339 = vtanh.f32 %v2232_v54  ;;  %v2321_v34 = vadd.f32 %v2320_v38, %v4118_v52  ;;  %v2322_v19 = vpop.f32.mrb[61].mxu1 }
 0x75b   :  { %v3322_v33 = vpop.eup %3321  ;;  %3341 = vtanh.f32 %v2234_v10  ;;  %v2323_v36 = vadd.f32 %v2322_v19, %v4118_v52 }
 0x75c   :  { %v3324_v61 = vpop.eup %3323  ;;  %3343 = vtanh.f32 %v2321_v34 }
 0x75d   :  { %v3326_v53 = vpop.eup %3325  ;;  %3345 = vtanh.f32 %v2323_v36  ;;  %v2959_v55 = vpack.c.bf16 %v3324_v61, %v3316_v30 }
 0x75e   :  { %v3328_v51 = vpop.eup %3327  ;;  %v2957_v1 = vpack.c.bf16 %v3326_v53, %v3318_v6 }
 0x75f   :  { %v3330_v5 = vpop.eup %3329  ;;  %v2967_v16 = vpack.c.bf16 %v3328_v51, %v3320_v9 }
 0x760   :  { %v3332_v3 = vpop.eup %3331  ;;  %2958 = vmatprep.subr.bf16.mxu0 %v2957_v1  ;;  %v2965_v4 = vpack.c.bf16 %v3330_v5, %v3322_v33 }
 0x761   :  { %v3334_v8 = vpop.eup %3333  ;;  %2960 = vmatpush1.bf16.msra.mxu0 %v2959_v55 }
 0x762   :  { %v3336_v17 = vpop.eup %3335  ;;  %2966 = vmatprep.subr.bf16.mxu1 %v2965_v4 }
 0x763   :  { %v3338_v56 = vpop.eup %3337  ;;  %2968 = vmatpush1.bf16.msra.mxu1 %v2967_v16 }
 0x764   :  { %v3340_v14 = vpop.eup %3339 }
 0x765   :  { %v3342_v52 = vpop.eup %3341  ;;  %v2963_v63 = vpack.c.bf16 %v3340_v14, %v3332_v3 }
 0x766   :  { %v3344_v27 = vpop.eup %3343  ;;  %v2961_v0 = vpack.c.bf16 %v3342_v52, %v3334_v8 }
 0x767   :  { %v3346_v45 = vpop.eup %3345  ;;  %v2971_v57 = vpack.c.bf16 %v3344_v27, %v3336_v17 }
 0x768   :  { %2962 = vmatprep.subr.bf16.mxu0 %v2961_v0  ;;  %v2969_v59 = vpack.c.bf16 %v3346_v45, %v3338_v56 }
 0x769   :  { %2964 = vmatpush1.bf16.msra.mxu0 %v2963_v63 }
 0x76a   :  { %2970 = vmatprep.subr.bf16.mxu1 %v2969_v59  ;;  %v3387_v59 = vld [vmem:[%s4623_s7] sm:$0x1]  ;;  %s3415_s7 = smov [#allocation3]  }
 0x76b   :  { %2972 = vmatpush1.bf16.msra.mxu1 %v2971_v57  ;;  %s2714_s1 = sshll.u32 %s3415_s7, 4  ;;  %s2715_s1 = int_to_ptr.vmem [resolvable:$true] %s2714_s1 }
 0x76c   :  { %2787 = vmatmul.mubr.msk.f32.vlgmr.msra.gmra.mrb[62].mxu0 %vm220_vm0, %v3383_v15  ;;  %s3388_s30 = scalar_lea.vmem %s2715_s1, 256  ;;  %p3393_p1 = scmp.lt.s32.totalorder %s2715_s1, %s2715_s1 }
 0x76d   :  { %2411 = vmatprep.mubr.f32.mxu0 %v4679_v49  ;;  %p3389_p0 = scmp.ne.s32.totalorder %s2715_s1, %s3388_s30  ;;  %p3394_p2 = scmp.lt.s32.totalorder %s3388_s30, %s3388_s30 }
 0x76e   :  { %2791 = vmatmul.mubr.msk.f32.vlgmr.msra.gmra.mrb[62].mxu1 %vm220_vm0, %v3383_v15 }
 0x76f   :  { %2500 = vmatprep.mubr.f32.mxu1 %v4679_v49  ;;  %p3395_p3 = por %p3394_p2, %p3393_p1 }
 0x770   :  { %2788 = vmatmul.mubr.msk.f32.gmra.mrb[64].mxu0 %vm220_vm0, %v3384_v23 }
 0x771   :  { %2417 = vmatprep.mubr.f32.mxu0 %v4679_v49  ;;  %p3396_p4 = pnand %p3395_p3, %p3389_p0 }
 0x772   :  { %2792 = vmatmul.mubr.msk.f32.gmra.mrb[64].mxu1 %vm220_vm0, %v3384_v23 }
 0x773   :  { %2506 = vmatprep.mubr.f32.mxu1 %v4679_v49 }
 0x774   :  { %2789 = vmatmul.mubr.msk.f32.gmra.mrb[66].mxu0 %vm220_vm0, %v3385_v46 }
 0x775   :  { %2423 = vmatprep.mubr.f32.mxu0 %v4679_v49 }
 0x776   :  { %2793 = vmatmul.mubr.msk.f32.gmra.mrb[66].mxu1 %vm220_vm0, %v3385_v46 }
 0x777   :  { %2512 = vmatprep.mubr.f32.mxu1 %v4679_v49 }
 0x778   :  { %2790 = vmatmul.mubr.msk.f32.gmra.mrb[68].mxu0 %vm220_vm0, %v3386_v18 }
 0x779   :  { %2599 = vmatprep.mubr.f32.mxu0 %v4679_v49 }
 0x77a   :  { %2794 = vmatmul.mubr.msk.f32.gmra.mrb[68].mxu1 %vm220_vm0, %v3386_v18 }
 0x77b   :  { %2670 = vmatprep.mubr.f32.mxu1 %v4679_v49 }
 0x83f   :  { %v2407_v32 = vpop.f32.mrb[62].mxu0 }
 0x840   :  { %v2408_v58 = vadd.f32 %v2407_v32, %v4169_v26  ;;  %v2409_v42 = vpop.f32.mrb[63].mxu0 }
 0x841   :  { %v2496_v43 = vpop.f32.mrb[62].mxu1  ;;  %v2410_v12 = vadd.f32 %v2409_v42, %v4169_v26 }
 0x842   :  { %3347 = vtanh.f32 %v2408_v58  ;;  %v2497_v29 = vadd.f32 %v2496_v43, %v4169_v26  ;;  %v2498_v7 = vpop.f32.mrb[63].mxu1 }
 0x843   :  { %3349 = vtanh.f32 %v2410_v12  ;;  %v2499_v44 = vadd.f32 %v2498_v7, %v4169_v26  ;;  %v2413_v24 = vpop.f32.mrb[64].mxu0 }
 0x844   :  { %3351 = vtanh.f32 %v2497_v29  ;;  %v2414_v50 = vadd.f32 %v2413_v24, %v4174_v20  ;;  %v2415_v37 = vpop.f32.mrb[65].mxu0 }
 0x845   :  { %3353 = vtanh.f32 %v2499_v44  ;;  %v2502_v49 = vpop.f32.mrb[64].mxu1  ;;  %v2416_v47 = vadd.f32 %v2415_v37, %v4174_v20 }
 0x846   :  { %3355 = vtanh.f32 %v2414_v50  ;;  %v2503_v48 = vadd.f32 %v2502_v49, %v4174_v20  ;;  %v2504_v22 = vpop.f32.mrb[65].mxu1 }
 0x847   :  { %3357 = vtanh.f32 %v2416_v47  ;;  %v2505_v11 = vadd.f32 %v2504_v22, %v4174_v20  ;;  %v2419_v62 = vpop.f32.mrb[66].mxu0 }
 0x848   :  { %3359 = vtanh.f32 %v2503_v48  ;;  %v2420_v26 = vadd.f32 %v2419_v62, %v4180_v60  ;;  %v2421_v28 = vpop.f32.mrb[67].mxu0 }
 0x849   :  { %3361 = vtanh.f32 %v2505_v11  ;;  %v2508_v39 = vpop.f32.mrb[66].mxu1  ;;  %v2422_v35 = vadd.f32 %v2421_v28, %v4180_v60 }
 0x84a   :  { %3363 = vtanh.f32 %v2420_v26  ;;  %v2509_v21 = vadd.f32 %v2508_v39, %v4180_v60  ;;  %v2510_v41 = vpop.f32.mrb[67].mxu1 }
 0x84b   :  { %3365 = vtanh.f32 %v2422_v35  ;;  %v2511_v30 = vadd.f32 %v2510_v41, %v4180_v60  ;;  %v2425_v54 = vpop.f32.mrb[68].mxu0 }
 0x84c   :  { %v3348_v40 = vpop.eup %3347  ;;  %3367 = vtanh.f32 %v2509_v21  ;;  %v2426_v20 = vadd.f32 %v2425_v54, %v4186_v25  ;;  %v2427_v6 = vpop.f32.mrb[69].mxu0 }
 0x84d   :  { %v3350_v38 = vpop.eup %3349  ;;  %3369 = vtanh.f32 %v2511_v30  ;;  %v2514_v10 = vpop.f32.mrb[68].mxu1  ;;  %v2428_v9 = vadd.f32 %v2427_v6, %v4186_v25 }
 0x84e   :  { %v3352_v34 = vpop.eup %3351  ;;  %3371 = vtanh.f32 %v2426_v20  ;;  %v2515_v19 = vadd.f32 %v2514_v10, %v4186_v25  ;;  %v2516_v33 = vpop.f32.mrb[69].mxu1 }
 0x84f   :  { %v3354_v36 = vpop.eup %3353  ;;  %3373 = vtanh.f32 %v2428_v9  ;;  %v2517_v60 = vadd.f32 %v2516_v33, %v4186_v25 }
 0x850   :  { %v3356_v61 = vpop.eup %3355  ;;  %3375 = vtanh.f32 %v2515_v19 }
 0x851   :  { %v3358_v53 = vpop.eup %3357  ;;  %3377 = vtanh.f32 %v2517_v60  ;;  %v2975_v55 = vpack.c.bf16 %v3356_v61, %v3348_v40 }
 0x852   :  { %v3360_v51 = vpop.eup %3359  ;;  %v2973_v1 = vpack.c.bf16 %v3358_v53, %v3350_v38 }
 0x853   :  { %v3362_v5 = vpop.eup %3361  ;;  %v2983_v16 = vpack.c.bf16 %v3360_v51, %v3352_v34 }
 0x854   :  { %v3364_v3 = vpop.eup %3363  ;;  %2974 = vmatprep.subr.bf16.mxu0 %v2973_v1  ;;  %v2981_v4 = vpack.c.bf16 %v3362_v5, %v3354_v36 }
 0x855   :  { %v3366_v8 = vpop.eup %3365  ;;  %2976 = vmatpush1.bf16.msra.mxu0 %v2975_v55 }
 0x856   :  { %v3368_v17 = vpop.eup %3367  ;;  %2982 = vmatprep.subr.bf16.mxu1 %v2981_v4 }
 0x857   :  { %v3370_v56 = vpop.eup %3369  ;;  %2984 = vmatpush1.bf16.msra.mxu1 %v2983_v16 }
 0x858   :  { %v3372_v14 = vpop.eup %3371 }
 0x859   :  { %v3374_v25 = vpop.eup %3373  ;;  %v2979_v52 = vpack.c.bf16 %v3372_v14, %v3364_v3 }
 0x85a   :  { %v3376_v63 = vpop.eup %3375  ;;  %v2977_v27 = vpack.c.bf16 %v3374_v25, %v3366_v8 }
 0x85b   :  { %v3378_v0 = vpop.eup %3377  ;;  %v2987_v45 = vpack.c.bf16 %v3376_v63, %v3368_v17 }
 0x85c   :  { %2978 = vmatprep.subr.bf16.mxu0 %v2977_v27  ;;  %v2985_v57 = vpack.c.bf16 %v3378_v0, %v3370_v56 }
 0x85d   :  { %2980 = vmatpush1.bf16.msra.mxu0 %v2979_v52 }
 0x85e   :  { %2986 = vmatprep.subr.bf16.mxu1 %v2985_v57 }
 0x85f   :  { %2988 = vmatpush1.bf16.msra.mxu1 %v2987_v45 }
 0x860   :  { %2795 = vmatmul.mubr.msk.f32.vlgmr.msra.gmra.mrb[70].mxu0 %vm220_vm0, %v3387_v59 }
 0x862   :  { %2796 = vmatmul.mubr.msk.f32.vlgmr.msra.gmra.mrb[70].mxu1 %vm220_vm0, %v3387_v59 }
 0x933   :  { %v2601_v15 = vpop.f32.mrb[70].mxu0 }
 0x934   :  { %v2602_v23 = vadd.f32 %v2601_v15, %v4253_v31  ;;  %v2603_v46 = vpop.f32.mrb[71].mxu0 }
 0x935   :  { %v2672_v18 = vpop.f32.mrb[70].mxu1  ;;  %v2604_v32 = vadd.f32 %v2603_v46, %v4253_v31 }
 0x936   :  { %v2673_v58 = vadd.f32 %v2672_v18, %v4253_v31  ;;  %v2674_v42 = vpop.f32.mrb[71].mxu1 }
 0x937   :  { %v2681_v43 = vcombine.low %v2602_v23, %v2604_v32  ;;  %v2675_v12 = vadd.f32 %v2674_v42, %v4253_v31 }
 0x939   :  { %v2689_v29 = vrot.slane %v2681_v43, %v4257_v2  ;;  %v2682_v7 = vcombine.low %v2673_v58, %v2675_v12 }
 0x93b   :  { %v2696_v44 = vrot.slane %v2682_v7, %v4257_v2 }
 0x93d   :  { %v2697_v24 = vcombine.low %v2689_v29, %v2696_v44 }
 0x93f   :  { %v2704_v50 = vrot.slane %v2697_v24, %v4257_v2 }
 0x941   :  { %2707 = vst.msk [vmem:[#allocation3 + $0xc] sm:$0xf] %vm4268_vm1, %v2704_v50 }
 0x942   :  { %3399 = shalt.err (!%p3396_p4)
}
 0x943   :  { %s3400_s2 = scalar_lea.hbm %s4625_s9, 256 }
 0x944   :  { %p3401_p5 = scmp.ne.s32.totalorder %s4625_s9, %s3400_s2  ;;  %p3404_p6 = scmp.lt.u32.totalorder %s3400_s2, %s4625_s9 }
 0x946   :  { %p3406_p7 = pnand %p3404_p6, %p3401_p5 }
 0x948   :  { %3409 = shalt.err (!%p3406_p7)
}
 0x949   :  { %2717 = dma.vmem_to_hbm [thread:$0]  %s2715_s1, 256, %s4625_s9, [#allocation4]  }
 0x94a   :  { %3410 = dma.done.wait [#allocation4], 256  }
 0x94b   :  { %3411 = vsyncadd [#allocation4], 4294967040 }
 0x94c   :  { %2721 = vsyncpa [#allocation4], 1 }

</bundles_post_ra>
